<compile_context>
chip_gen: v7x
topology: tpu7x:2x2x1
jax: 0.10.0
libtpu: 0.0.40
codegen_flags: <defaults>
</compile_context>

<pallas_src>
import functools

import jax
import jax.numpy as jnp
from jax import lax
from jax.experimental import pallas as pl
from jax.experimental.pallas import tpu as pltpu


# -----------------------------------------------------------------------------
# Fused kernel: bidirectional LSTM (proj_size > 0, PyTorch gate order i,f,g,o)
# + flatten + BN1 -> fc_1 -> ReLU -> BN2 -> fc_out + residual.
# Whole problem fits in VMEM; grid=() single invocation.
# -----------------------------------------------------------------------------
def seq_rnn_kernel(xcat_ref, wih_ref, whh_ref, bias_ref, wcomb_ref, wbig_ref,
                   h0_ref, c0_ref, res_ref, hv_ref, w1_ref, wout_ref,
                   out_ref, gpre_ref):
    # xcat_ref : (T, B, 2I) f32   [x_t | x_{T-1-t}]  (built in the wrapper)
    # wih_ref  : (2I, GGP)  bf16  stacked [W_ih_fwd^T ; W_ih_bwd^T], padded gate layout
    # whh_ref  : (2P, GGP)  bf16  stacked [W_hh_fwd^T ; W_hh_bwd^T], padded gate layout
    # bias_ref : (1, GGP)   f32   summed LSTM biases, padded gate layout
    # wcomb_ref: (2H, GGP)  bf16  W_hr^T @ W_hh^T (projection folded into recurrence)
    # wbig_ref : (T*2H, F)  bf16  block-diag projection+flatten (+bwd time reversal)
    # h0_ref   : (2, B, P) f32, c0_ref : (2, B, H) f32, res_ref : (B, n_out) f32
    # hv_ref   : (6, F) f32  [bn1_g, bn1_b, fc1_b, bn2_g, bn2_b, fc_out_b(padded)]
    # w1_ref   : (F, F) bf16, wout_ref : (F, n_out) bf16
    # out_ref  : (B, out_w) f32 packed [sig_out | hn_f | hn_b | cn_f | cn_b | pad]
    # gpre_ref : (T, B, GGP) f32 scratch (gate pre-activations, off the serial chain)
    T, B, _ = xcat_ref.shape
    GGP = wih_ref.shape[1]
    GP = GGP // 4                     # per-gate lane pitch (multiple of 128)
    P = h0_ref.shape[2]
    H = c0_ref.shape[2]
    HH = 2 * H
    PP = 2 * P
    n_out = res_ref.shape[1]
    bf = jnp.bfloat16
    f32 = jnp.float32

    # ---- gate precompute (off the recurrence chain) --------------------------
    # h0 is the *projected* hidden, so it cannot go through wcomb; fold its W_hh
    # contribution into the loop-step-0 pre-activations (first fwd & first bwd step).
    h0cat = jnp.concatenate([h0_ref[0], h0_ref[1]], axis=-1)             # (B, 2P)
    h0term = jnp.dot(h0cat.astype(bf), whh_ref[...],
                     preferred_element_type=f32)                          # (B, GGP)
    bias = bias_ref[...]                                                  # (1, GGP)
    for t in range(T):   # T tiny bf16 matmuls, fully pipelined, off the serial chain
        v = jnp.dot(xcat_ref[t].astype(bf), wih_ref[...],
                    preferred_element_type=f32) + bias
        if t == 0:
            v = v + h0term
        gpre_ref[t] = v

    # ---- fused bidirectional recurrence: T serial steps, ONE matmul each -----
    wcomb = wcomb_ref[...]                                  # (2H, GGP) bf16, invariant
    c = jnp.concatenate([c0_ref[0], c0_ref[1]], axis=-1)    # (B, 2H) f32 [c_f | c_b]
    h_full = jnp.zeros((B, HH), f32)                        # raw (unprojected) [h_f | h_b]
    hs = []
    for t in range(T):   # static unroll; the dependency chain bounds liveness
        g = gpre_ref[t] + jnp.dot(h_full.astype(bf), wcomb,
                                  preferred_element_type=f32)            # (B, GGP)
        # each gate slice starts on a 128-lane boundary and its 64 active lanes
        # line up with c / h_full -> no lane rotates, per-slice EUP only.
        i_s = jax.nn.sigmoid(g[:, 0:HH])
        f_s = jax.nn.sigmoid(g[:, GP:GP + HH])
        g_t = jnp.tanh(g[:, 2 * GP:2 * GP + HH])
        o_s = jax.nn.sigmoid(g[:, 3 * GP:3 * GP + HH])
        c = f_s * c + i_s * g_t
        h_full = o_s * jnp.tanh(c)
        hs.append(h_full)

    # ---- deferred projection + flatten: one block-diagonal bf16 matmul -------
    stash = jnp.concatenate(hs, axis=-1)                                  # (B, T*2H)
    fc_in = jnp.dot(stash.astype(bf), wbig_ref[...],
                    preferred_element_type=f32)                           # (B, F), flatten order

    hn_f = fc_in[:, (T - 1) * PP:(T - 1) * PP + P]   # fwd projected h at time T-1
    hn_b = fc_in[:, P:PP]                            # bwd projected h after full reverse pass

    # ---- BN1 -> fc_1 -> ReLU -> BN2 -> fc_out (+residual); training-mode BN --
    eps = 1e-5
    hv = hv_ref[...]
    g1, be1, b1, g2, be2 = hv[0:1], hv[1:2], hv[2:3], hv[3:4], hv[4:5]
    b_out = hv[5:6, 0:n_out]

    m1 = jnp.mean(fc_in, axis=0, keepdims=True)
    v1 = jnp.mean(jnp.square(fc_in - m1), axis=0, keepdims=True)
    xn = (fc_in - m1) * lax.rsqrt(v1 + eps) * g1 + be1

    mid = jnp.dot(xn.astype(bf), w1_ref[...], preferred_element_type=f32) + b1
    r = jnp.maximum(mid, 0.0)

    m2 = jnp.mean(r, axis=0, keepdims=True)
    v2 = jnp.mean(jnp.square(r - m2), axis=0, keepdims=True)
    rn = (r - m2) * lax.rsqrt(v2 + eps) * g2 + be2

    sig_out = (jnp.dot(rn.astype(bf), wout_ref[...], preferred_element_type=f32)
               + b_out + res_ref[...])

    # ---- single lane-dense packed output (unmasked store, one output DMA) ----
    pieces = [sig_out, hn_f, hn_b, c[:, 0:H], c[:, H:HH]]
    pad = out_ref.shape[1] - (n_out + PP + HH)
    if pad > 0:
        pieces.append(jnp.zeros((B, pad), f32))
    out_ref[...] = jnp.concatenate(pieces, axis=-1)


# -----------------------------------------------------------------------------
# Full forward, mirroring SequentialRNNNet.forward (single fused pallas_call)
# -----------------------------------------------------------------------------
def sequential_rnn_net(params, sig, h_0, c_0, *, batch_sz, seqL, input_size):
    B, T, I = batch_sz, seqL, input_size
    P = h_0.shape[2]
    H = c_0.shape[2]
    n_out = sig.shape[1]
    GGP = params["wih_stack"].shape[1]
    out_w = ((n_out + 2 * P + 2 * H + 127) // 128) * 128   # lane-dense packed output width

    x = jnp.transpose(sig.reshape(B, T, I), (1, 0, 2))      # (T, B, I) time-major
    xcat = jnp.concatenate([x, x[::-1]], axis=-1)           # (T, B, 2I): [x_t | x_{T-1-t}]

    vmem = pl.BlockSpec(memory_space=pltpu.MemorySpace.VMEM)
    packed = pl.pallas_call(
        seq_rnn_kernel,
        out_shape=jax.ShapeDtypeStruct((B, out_w), jnp.float32),
        in_specs=[vmem] * 12,
        out_specs=vmem,
        scratch_shapes=[
            pltpu.VMEM((T, B, GGP), jnp.float32),   # gate pre-activations
        ],
    )(xcat, params["wih_stack"], params["whh_stack"], params["bias_sum"],
      params["wcomb"], params["wbig"], h_0, c_0, sig,
      params["head_vecs"], params["w1_t"], params["w_out_t"])

    sig_out = packed[:, :n_out]
    o = n_out
    h_n = jnp.stack([packed[:, o:o + P], packed[:, o + P:o + 2 * P]])
    o = n_out + 2 * P
    c_n = jnp.stack([packed[:, o:o + H], packed[:, o + H:o + 2 * H]])
    return sig_out, h_n, c_n


# -----------------------------------------------------------------------------
# Deterministic parameter init (mirrors _initialize_weights) + kernel layouts
# -----------------------------------------------------------------------------
def init_params(key, I, H, P, T, sig2fc):
    G = 4 * H                      # per-direction gate width
    HH, PP = 2 * H, 2 * P
    GP = ((HH + 127) // 128) * 128  # padded per-gate lane pitch (vreg aligned)
    GGP = 4 * GP
    F = T * PP
    n_out = 2 * sig2fc
    k = jax.random.split(key, 5)

    # weight_ih_l0(_reverse): nn.init.eye_  -> rectangular identity (4H, I)
    w_ih = jnp.stack([jnp.eye(G, I, dtype=jnp.float32)] * 2)            # (2, 4H, I)

    # weight_hh: orthogonal with gain sqrt(2) (calculate_gain('relu'))
    def ortho(kk, rows, cols, gain):
        a = jax.random.normal(kk, (rows, cols), jnp.float32)
        q, r = jnp.linalg.qr(a)
        q = q * jnp.sign(jnp.diag(r))[None, :]
        return gain * q
    w_hh = jnp.stack([ortho(k[0], G, P, 2.0 ** 0.5),
                      ortho(k[1], G, P, 2.0 ** 0.5)])                   # (2, 4H, P)

    # weight_hr: untouched -> PyTorch default uniform(-1/sqrt(H), 1/sqrt(H))
    lim = 1.0 / (H ** 0.5)
    w_hr = jax.random.uniform(k[2], (2, P, H), jnp.float32, -lim, lim)  # (2, P, H)

    wih_t = jnp.transpose(w_ih, (0, 2, 1))   # (2, I, 4H)   columns [i|f|g|o]
    whh_t = jnp.transpose(w_hh, (0, 2, 1))   # (2, P, 4H)
    whr_t = jnp.transpose(w_hr, (0, 2, 1))   # (2, H, P)

    # scatter per-direction gate columns into the padded fused layout:
    # gate q occupies lanes [q*GP, q*GP+2H); dir d occupies [q*GP+d*H, q*GP+(d+1)*H)
    def scatter_gates(w_d, d):
        out = jnp.zeros((w_d.shape[0], GGP), jnp.float32)
        for q in range(4):
            out = out.at[:, q * GP + d * H: q * GP + (d + 1) * H].set(
                w_d[:, q * H:(q + 1) * H])
        return out

    wih_stack = jnp.concatenate([scatter_gates(wih_t[0], 0),
                                 scatter_gates(wih_t[1], 1)], axis=0)   # (2I, GGP)
    whh_stack = jnp.concatenate([scatter_gates(whh_t[0], 0),
                                 scatter_gates(whh_t[1], 1)], axis=0)   # (2P, GGP)
    bias_sum = jnp.zeros((1, GGP), jnp.float32)                          # b_ih + b_hh = 0

    # W_comb_d = W_hr_d^T @ W_hh_d^T  (projection folded into the recurrence)
    wcomb = jnp.zeros((HH, GGP), jnp.float32)
    for d in range(2):
        wc_d = scatter_gates(jnp.dot(whr_t[d], whh_t[d]), d)             # (H, GGP)
        wcomb = wcomb.at[d * H:(d + 1) * H, :].set(wc_d)

    # block-diagonal projection + flatten (+backward time-reversal): (T*2H, F)
    # stash cols [s*2H : s*2H+H]      = fwd raw h at time s
    # stash cols [s*2H+H : (s+1)*2H]  = bwd raw h for original time T-1-s
    wbig = jnp.zeros((T * HH, F), jnp.float32)
    for t in range(T):
        wbig = wbig.at[t * HH:t * HH + H, t * PP:t * PP + P].set(whr_t[0])
        s = T - 1 - t
        wbig = wbig.at[s * HH + H:(s + 1) * HH, t * PP + P:(t + 1) * PP].set(whr_t[1])

    # FC head: kaiming_uniform (relu), zero biases; BN gamma=1, beta=0
    def kaiming_uniform(kk, fan_out, fan_in):
        bound = (6.0 / fan_in) ** 0.5
        return jax.random.uniform(kk, (fan_out, fan_in), jnp.float32, -bound, bound)

    w1 = kaiming_uniform(k[3], F, F)
    w_out = kaiming_uniform(k[4], n_out, F)

    head_vecs = jnp.stack([jnp.ones((F,), jnp.float32),    # bn_1 gamma
                           jnp.zeros((F,), jnp.float32),   # bn_1 beta
                           jnp.zeros((F,), jnp.float32),   # fc_1 bias
                           jnp.ones((F,), jnp.float32),    # bn_2 gamma
                           jnp.zeros((F,), jnp.float32),   # bn_2 beta
                           jnp.zeros((F,), jnp.float32)])  # fc_out bias (first n_out lanes)

    bf = jnp.bfloat16
    return dict(
        wih_stack=wih_stack.astype(bf),
        whh_stack=whh_stack.astype(bf),
        bias_sum=bias_sum,
        wcomb=wcomb.astype(bf),
        wbig=wbig.astype(bf),
        head_vecs=head_vecs,
        w1_t=w1.T.astype(bf),
        w_out_t=w_out.T.astype(bf),
    )


if __name__ == "__main__":
    # Small-shape configuration consistent with the module:
    # input_size=8, cell_size(H)=32, proj_size(P)=16, sig_to_fc=32 -> seqL=8, bi=2, batch=2
    B, I, H, P, SIG2FC = 2, 8, 32, 16, 32
    T = 2 * SIG2FC // I  # seqL = 8

    key = jax.random.PRNGKey(0)
    kp, kx, kh, kc = jax.random.split(key, 4)
    params = init_params(kp, I, H, P, T, SIG2FC)

    sig = jax.random.normal(kx, (B, 2 * SIG2FC), jnp.float32)   # residual input
    h_0 = jax.random.normal(kh, (2, B, P), jnp.float32)         # (num_layers*2, B, proj)
    c_0 = jax.random.normal(kc, (2, B, H), jnp.float32)         # (num_layers*2, B, hidden)

    fwd = jax.jit(functools.partial(sequential_rnn_net,
                                    batch_sz=B, seqL=T, input_size=I))
    sig_out, h_n, c_n = fwd(params, sig, h_0, c_0)
    jax.block_until_ready((sig_out, h_n, c_n))

    assert sig_out.shape == (B, 2 * SIG2FC)
    assert h_n.shape == (2, B, P)
    assert c_n.shape == (2, B, H)
    assert jnp.all(jnp.isfinite(sig_out))
    assert jnp.all(jnp.isfinite(h_n)) and jnp.all(jnp.isfinite(c_n))
    print("KERNEL_OK")
</pallas_src>

<mosaic_0001>
module attributes {stable_mosaic.version = 11 : i64} {
  func.func @seq_rnn_kernel(%arg0: memref<8x2x16xf32, #tpu.memory_space<vmem>>, %arg1: memref<16x512xbf16, #tpu.memory_space<vmem>>, %arg2: memref<32x512xbf16, #tpu.memory_space<vmem>>, %arg3: memref<1x512xf32, #tpu.memory_space<vmem>>, %arg4: memref<64x512xbf16, #tpu.memory_space<vmem>>, %arg5: memref<512x256xbf16, #tpu.memory_space<vmem>>, %arg6: memref<2x2x16xf32, #tpu.memory_space<vmem>>, %arg7: memref<2x2x32xf32, #tpu.memory_space<vmem>>, %arg8: memref<2x64xf32, #tpu.memory_space<vmem>>, %arg9: memref<6x256xf32, #tpu.memory_space<vmem>>, %arg10: memref<256x256xbf16, #tpu.memory_space<vmem>>, %arg11: memref<256x64xbf16, #tpu.memory_space<vmem>>, %arg12: memref<2x256xf32, #tpu.memory_space<vmem>>, %arg13: memref<8x2x512xf32, #tpu.memory_space<vmem>>) attributes {dimension_semantics = [], scalar_prefetch = 0 : i64, scratch_operands = 1 : i64, tpu.core_type = #tpu.core_type<tc>} {
    %c0 = arith.constant 0 : index
    %c0_0 = arith.constant 0 : index
    %c0_1 = arith.constant 0 : index
    %0 = vector.load %arg6[%c0, %c0_0, %c0_1] : memref<2x2x16xf32, #tpu.memory_space<vmem>>, vector<1x2x16xf32>
    %1 = vector.shape_cast %0 : vector<1x2x16xf32> to vector<2x16xf32>
    %c1 = arith.constant 1 : index
    %c0_2 = arith.constant 0 : index
    %c0_3 = arith.constant 0 : index
    %2 = vector.load %arg6[%c1, %c0_2, %c0_3] : memref<2x2x16xf32, #tpu.memory_space<vmem>>, vector<1x2x16xf32>
    %3 = vector.shape_cast %2 : vector<1x2x16xf32> to vector<2x16xf32>
    %4 = tpu.concatenate %1, %3 in 1 : vector<2x16xf32>, vector<2x16xf32> -> vector<2x32xf32>
    %5 = arith.truncf %4 : vector<2x32xf32> to vector<2x32xbf16>
    %c0_4 = arith.constant 0 : index
    %c0_5 = arith.constant 0 : index
    %6 = vector.load %arg2[%c0_4, %c0_5] : memref<32x512xbf16, #tpu.memory_space<vmem>>, vector<32x512xbf16>
    %cst = arith.constant dense<0.000000e+00> : vector<2x512xf32>
    %7 = tpu.matmul %5, %6, %cst {dimension_numbers = #tpu.dot_dimension_numbers<[1], [0], [0], [1], [0, 0, 1, 1], [], []>} : vector<2x32xbf16>, vector<32x512xbf16>, vector<2x512xf32> -> vector<2x512xf32>
    %c0_6 = arith.constant 0 : index
    %c0_7 = arith.constant 0 : index
    %8 = vector.load %arg3[%c0_6, %c0_7] : memref<1x512xf32, #tpu.memory_space<vmem>>, vector<1x512xf32>
    %c0_8 = arith.constant 0 : index
    %c0_9 = arith.constant 0 : index
    %c0_10 = arith.constant 0 : index
    %9 = vector.load %arg0[%c0_8, %c0_9, %c0_10] : memref<8x2x16xf32, #tpu.memory_space<vmem>>, vector<1x2x16xf32>
    %10 = vector.shape_cast %9 : vector<1x2x16xf32> to vector<2x16xf32>
    %11 = arith.truncf %10 : vector<2x16xf32> to vector<2x16xbf16>
    %c0_11 = arith.constant 0 : index
    %c0_12 = arith.constant 0 : index
    %12 = vector.load %arg1[%c0_11, %c0_12] : memref<16x512xbf16, #tpu.memory_space<vmem>>, vector<16x512xbf16>
    %cst_13 = arith.constant dense<0.000000e+00> : vector<2x512xf32>
    %13 = tpu.matmul %11, %12, %cst_13 {dimension_numbers = #tpu.dot_dimension_numbers<[1], [0], [0], [1], [0, 0, 1, 1], [], []>} : vector<2x16xbf16>, vector<16x512xbf16>, vector<2x512xf32> -> vector<2x512xf32>
    %14 = vector.broadcast %8 : vector<1x512xf32> to vector<2x512xf32>
    %15 = arith.addf %13, %14 : vector<2x512xf32>
    %16 = arith.addf %15, %7 : vector<2x512xf32>
    %c0_14 = arith.constant 0 : index
    %c0_15 = arith.constant 0 : index
    %c0_16 = arith.constant 0 : index
    %17 = vector.load %arg13[%c0_14, %c0_15, %c0_16] : memref<8x2x512xf32, #tpu.memory_space<vmem>>, vector<1x2x512xf32>
    %18 = vector.shape_cast %17 : vector<1x2x512xf32> to vector<2x512xf32>
    %19 = vector.shape_cast %16 : vector<2x512xf32> to vector<1x2x512xf32>
    tpu.vector_store %arg13[%c0_14, %c0_15, %c0_16], %19 {strides = array<i32>} : memref<8x2x512xf32, #tpu.memory_space<vmem>>, vector<1x2x512xf32>,
    %c1_17 = arith.constant 1 : index
    %c0_18 = arith.constant 0 : index
    %c0_19 = arith.constant 0 : index
    %20 = vector.load %arg0[%c1_17, %c0_18, %c0_19] : memref<8x2x16xf32, #tpu.memory_space<vmem>>, vector<1x2x16xf32>
    %21 = vector.shape_cast %20 : vector<1x2x16xf32> to vector<2x16xf32>
    %22 = arith.truncf %21 : vector<2x16xf32> to vector<2x16xbf16>
    %c0_20 = arith.constant 0 : index
    %c0_21 = arith.constant 0 : index
    %23 = vector.load %arg1[%c0_20, %c0_21] : memref<16x512xbf16, #tpu.memory_space<vmem>>, vector<16x512xbf16>
    %cst_22 = arith.constant dense<0.000000e+00> : vector<2x512xf32>
    %24 = tpu.matmul %22, %23, %cst_22 {dimension_numbers = #tpu.dot_dimension_numbers<[1], [0], [0], [1], [0, 0, 1, 1], [], []>} : vector<2x16xbf16>, vector<16x512xbf16>, vector<2x512xf32> -> vector<2x512xf32>
    %25 = vector.broadcast %8 : vector<1x512xf32> to vector<2x512xf32>
    %26 = arith.addf %24, %25 : vector<2x512xf32>
    %c1_23 = arith.constant 1 : index
    %c0_24 = arith.constant 0 : index
    %c0_25 = arith.constant 0 : index
    %27 = vector.load %arg13[%c1_23, %c0_24, %c0_25] : memref<8x2x512xf32, #tpu.memory_space<vmem>>, vector<1x2x512xf32>
    %28 = vector.shape_cast %27 : vector<1x2x512xf32> to vector<2x512xf32>
    %29 = vector.shape_cast %26 : vector<2x512xf32> to vector<1x2x512xf32>
    tpu.vector_store %arg13[%c1_23, %c0_24, %c0_25], %29 {strides = array<i32>} : memref<8x2x512xf32, #tpu.memory_space<vmem>>, vector<1x2x512xf32>,
    %c2 = arith.constant 2 : index
    %c0_26 = arith.constant 0 : index
    %c0_27 = arith.constant 0 : index
    %30 = vector.load %arg0[%c2, %c0_26, %c0_27] : memref<8x2x16xf32, #tpu.memory_space<vmem>>, vector<1x2x16xf32>
    %31 = vector.shape_cast %30 : vector<1x2x16xf32> to vector<2x16xf32>
    %32 = arith.truncf %31 : vector<2x16xf32> to vector<2x16xbf16>
    %c0_28 = arith.constant 0 : index
    %c0_29 = arith.constant 0 : index
    %33 = vector.load %arg1[%c0_28, %c0_29] : memref<16x512xbf16, #tpu.memory_space<vmem>>, vector<16x512xbf16>
    %cst_30 = arith.constant dense<0.000000e+00> : vector<2x512xf32>
    %34 = tpu.matmul %32, %33, %cst_30 {dimension_numbers = #tpu.dot_dimension_numbers<[1], [0], [0], [1], [0, 0, 1, 1], [], []>} : vector<2x16xbf16>, vector<16x512xbf16>, vector<2x512xf32> -> vector<2x512xf32>
    %35 = vector.broadcast %8 : vector<1x512xf32> to vector<2x512xf32>
    %36 = arith.addf %34, %35 : vector<2x512xf32>
    %c2_31 = arith.constant 2 : index
    %c0_32 = arith.constant 0 : index
    %c0_33 = arith.constant 0 : index
    %37 = vector.load %arg13[%c2_31, %c0_32, %c0_33] : memref<8x2x512xf32, #tpu.memory_space<vmem>>, vector<1x2x512xf32>
    %38 = vector.shape_cast %37 : vector<1x2x512xf32> to vector<2x512xf32>
    %39 = vector.shape_cast %36 : vector<2x512xf32> to vector<1x2x512xf32>
    tpu.vector_store %arg13[%c2_31, %c0_32, %c0_33], %39 {strides = array<i32>} : memref<8x2x512xf32, #tpu.memory_space<vmem>>, vector<1x2x512xf32>,
    %c3 = arith.constant 3 : index
    %c0_34 = arith.constant 0 : index
    %c0_35 = arith.constant 0 : index
    %40 = vector.load %arg0[%c3, %c0_34, %c0_35] : memref<8x2x16xf32, #tpu.memory_space<vmem>>, vector<1x2x16xf32>
    %41 = vector.shape_cast %40 : vector<1x2x16xf32> to vector<2x16xf32>
    %42 = arith.truncf %41 : vector<2x16xf32> to vector<2x16xbf16>
    %c0_36 = arith.constant 0 : index
    %c0_37 = arith.constant 0 : index
    %43 = vector.load %arg1[%c0_36, %c0_37] : memref<16x512xbf16, #tpu.memory_space<vmem>>, vector<16x512xbf16>
    %cst_38 = arith.constant dense<0.000000e+00> : vector<2x512xf32>
    %44 = tpu.matmul %42, %43, %cst_38 {dimension_numbers = #tpu.dot_dimension_numbers<[1], [0], [0], [1], [0, 0, 1, 1], [], []>} : vector<2x16xbf16>, vector<16x512xbf16>, vector<2x512xf32> -> vector<2x512xf32>
    %45 = vector.broadcast %8 : vector<1x512xf32> to vector<2x512xf32>
    %46 = arith.addf %44, %45 : vector<2x512xf32>
    %c3_39 = arith.constant 3 : index
    %c0_40 = arith.constant 0 : index
    %c0_41 = arith.constant 0 : index
    %47 = vector.load %arg13[%c3_39, %c0_40, %c0_41] : memref<8x2x512xf32, #tpu.memory_space<vmem>>, vector<1x2x512xf32>
    %48 = vector.shape_cast %47 : vector<1x2x512xf32> to vector<2x512xf32>
    %49 = vector.shape_cast %46 : vector<2x512xf32> to vector<1x2x512xf32>
    tpu.vector_store %arg13[%c3_39, %c0_40, %c0_41], %49 {strides = array<i32>} : memref<8x2x512xf32, #tpu.memory_space<vmem>>, vector<1x2x512xf32>,
    %c4 = arith.constant 4 : index
    %c0_42 = arith.constant 0 : index
    %c0_43 = arith.constant 0 : index
    %50 = vector.load %arg0[%c4, %c0_42, %c0_43] : memref<8x2x16xf32, #tpu.memory_space<vmem>>, vector<1x2x16xf32>
    %51 = vector.shape_cast %50 : vector<1x2x16xf32> to vector<2x16xf32>
    %52 = arith.truncf %51 : vector<2x16xf32> to vector<2x16xbf16>
    %c0_44 = arith.constant 0 : index
    %c0_45 = arith.constant 0 : index
    %53 = vector.load %arg1[%c0_44, %c0_45] : memref<16x512xbf16, #tpu.memory_space<vmem>>, vector<16x512xbf16>
    %cst_46 = arith.constant dense<0.000000e+00> : vector<2x512xf32>
    %54 = tpu.matmul %52, %53, %cst_46 {dimension_numbers = #tpu.dot_dimension_numbers<[1], [0], [0], [1], [0, 0, 1, 1], [], []>} : vector<2x16xbf16>, vector<16x512xbf16>, vector<2x512xf32> -> vector<2x512xf32>
    %55 = vector.broadcast %8 : vector<1x512xf32> to vector<2x512xf32>
    %56 = arith.addf %54, %55 : vector<2x512xf32>
    %c4_47 = arith.constant 4 : index
    %c0_48 = arith.constant 0 : index
    %c0_49 = arith.constant 0 : index
    %57 = vector.load %arg13[%c4_47, %c0_48, %c0_49] : memref<8x2x512xf32, #tpu.memory_space<vmem>>, vector<1x2x512xf32>
    %58 = vector.shape_cast %57 : vector<1x2x512xf32> to vector<2x512xf32>
    %59 = vector.shape_cast %56 : vector<2x512xf32> to vector<1x2x512xf32>
    tpu.vector_store %arg13[%c4_47, %c0_48, %c0_49], %59 {strides = array<i32>} : memref<8x2x512xf32, #tpu.memory_space<vmem>>, vector<1x2x512xf32>,
    %c5 = arith.constant 5 : index
    %c0_50 = arith.constant 0 : index
    %c0_51 = arith.constant 0 : index
    %60 = vector.load %arg0[%c5, %c0_50, %c0_51] : memref<8x2x16xf32, #tpu.memory_space<vmem>>, vector<1x2x16xf32>
    %61 = vector.shape_cast %60 : vector<1x2x16xf32> to vector<2x16xf32>
    %62 = arith.truncf %61 : vector<2x16xf32> to vector<2x16xbf16>
    %c0_52 = arith.constant 0 : index
    %c0_53 = arith.constant 0 : index
    %63 = vector.load %arg1[%c0_52, %c0_53] : memref<16x512xbf16, #tpu.memory_space<vmem>>, vector<16x512xbf16>
    %cst_54 = arith.constant dense<0.000000e+00> : vector<2x512xf32>
    %64 = tpu.matmul %62, %63, %cst_54 {dimension_numbers = #tpu.dot_dimension_numbers<[1], [0], [0], [1], [0, 0, 1, 1], [], []>} : vector<2x16xbf16>, vector<16x512xbf16>, vector<2x512xf32> -> vector<2x512xf32>
    %65 = vector.broadcast %8 : vector<1x512xf32> to vector<2x512xf32>
    %66 = arith.addf %64, %65 : vector<2x512xf32>
    %c5_55 = arith.constant 5 : index
    %c0_56 = arith.constant 0 : index
    %c0_57 = arith.constant 0 : index
    %67 = vector.load %arg13[%c5_55, %c0_56, %c0_57] : memref<8x2x512xf32, #tpu.memory_space<vmem>>, vector<1x2x512xf32>
    %68 = vector.shape_cast %67 : vector<1x2x512xf32> to vector<2x512xf32>
    %69 = vector.shape_cast %66 : vector<2x512xf32> to vector<1x2x512xf32>
    tpu.vector_store %arg13[%c5_55, %c0_56, %c0_57], %69 {strides = array<i32>} : memref<8x2x512xf32, #tpu.memory_space<vmem>>, vector<1x2x512xf32>,
    %c6 = arith.constant 6 : index
    %c0_58 = arith.constant 0 : index
    %c0_59 = arith.constant 0 : index
    %70 = vector.load %arg0[%c6, %c0_58, %c0_59] : memref<8x2x16xf32, #tpu.memory_space<vmem>>, vector<1x2x16xf32>
    %71 = vector.shape_cast %70 : vector<1x2x16xf32> to vector<2x16xf32>
    %72 = arith.truncf %71 : vector<2x16xf32> to vector<2x16xbf16>
    %c0_60 = arith.constant 0 : index
    %c0_61 = arith.constant 0 : index
    %73 = vector.load %arg1[%c0_60, %c0_61] : memref<16x512xbf16, #tpu.memory_space<vmem>>, vector<16x512xbf16>
    %cst_62 = arith.constant dense<0.000000e+00> : vector<2x512xf32>
    %74 = tpu.matmul %72, %73, %cst_62 {dimension_numbers = #tpu.dot_dimension_numbers<[1], [0], [0], [1], [0, 0, 1, 1], [], []>} : vector<2x16xbf16>, vector<16x512xbf16>, vector<2x512xf32> -> vector<2x512xf32>
    %75 = vector.broadcast %8 : vector<1x512xf32> to vector<2x512xf32>
    %76 = arith.addf %74, %75 : vector<2x512xf32>
    %c6_63 = arith.constant 6 : index
    %c0_64 = arith.constant 0 : index
    %c0_65 = arith.constant 0 : index
    %77 = vector.load %arg13[%c6_63, %c0_64, %c0_65] : memref<8x2x512xf32, #tpu.memory_space<vmem>>, vector<1x2x512xf32>
    %78 = vector.shape_cast %77 : vector<1x2x512xf32> to vector<2x512xf32>
    %79 = vector.shape_cast %76 : vector<2x512xf32> to vector<1x2x512xf32>
    tpu.vector_store %arg13[%c6_63, %c0_64, %c0_65], %79 {strides = array<i32>} : memref<8x2x512xf32, #tpu.memory_space<vmem>>, vector<1x2x512xf32>,
    %c7 = arith.constant 7 : index
    %c0_66 = arith.constant 0 : index
    %c0_67 = arith.constant 0 : index
    %80 = vector.load %arg0[%c7, %c0_66, %c0_67] : memref<8x2x16xf32, #tpu.memory_space<vmem>>, vector<1x2x16xf32>
    %81 = vector.shape_cast %80 : vector<1x2x16xf32> to vector<2x16xf32>
    %82 = arith.truncf %81 : vector<2x16xf32> to vector<2x16xbf16>
    %c0_68 = arith.constant 0 : index
    %c0_69 = arith.constant 0 : index
    %83 = vector.load %arg1[%c0_68, %c0_69] : memref<16x512xbf16, #tpu.memory_space<vmem>>, vector<16x512xbf16>
    %cst_70 = arith.constant dense<0.000000e+00> : vector<2x512xf32>
    %84 = tpu.matmul %82, %83, %cst_70 {dimension_numbers = #tpu.dot_dimension_numbers<[1], [0], [0], [1], [0, 0, 1, 1], [], []>} : vector<2x16xbf16>, vector<16x512xbf16>, vector<2x512xf32> -> vector<2x512xf32>
    %85 = vector.broadcast %8 : vector<1x512xf32> to vector<2x512xf32>
    %86 = arith.addf %84, %85 : vector<2x512xf32>
    %c7_71 = arith.constant 7 : index
    %c0_72 = arith.constant 0 : index
    %c0_73 = arith.constant 0 : index
    %87 = vector.load %arg13[%c7_71, %c0_72, %c0_73] : memref<8x2x512xf32, #tpu.memory_space<vmem>>, vector<1x2x512xf32>
    %88 = vector.shape_cast %87 : vector<1x2x512xf32> to vector<2x512xf32>
    %89 = vector.shape_cast %86 : vector<2x512xf32> to vector<1x2x512xf32>
    tpu.vector_store %arg13[%c7_71, %c0_72, %c0_73], %89 {strides = array<i32>} : memref<8x2x512xf32, #tpu.memory_space<vmem>>, vector<1x2x512xf32>,
    %c0_74 = arith.constant 0 : index
    %c0_75 = arith.constant 0 : index
    %90 = vector.load %arg4[%c0_74, %c0_75] : memref<64x512xbf16, #tpu.memory_space<vmem>>, vector<64x512xbf16>
    %c0_76 = arith.constant 0 : index
    %c0_77 = arith.constant 0 : index
    %c0_78 = arith.constant 0 : index
    %91 = vector.load %arg7[%c0_76, %c0_77, %c0_78] : memref<2x2x32xf32, #tpu.memory_space<vmem>>, vector<1x2x32xf32>
    %92 = vector.shape_cast %91 : vector<1x2x32xf32> to vector<2x32xf32>
    %c1_79 = arith.constant 1 : index
    %c0_80 = arith.constant 0 : index
    %c0_81 = arith.constant 0 : index
    %93 = vector.load %arg7[%c1_79, %c0_80, %c0_81] : memref<2x2x32xf32, #tpu.memory_space<vmem>>, vector<1x2x32xf32>
    %94 = vector.shape_cast %93 : vector<1x2x32xf32> to vector<2x32xf32>
    %95 = tpu.concatenate %92, %94 in 1 : vector<2x32xf32>, vector<2x32xf32> -> vector<2x64xf32>
    %cst_82 = arith.constant 0.000000e+00 : f32
    %96 = vector.broadcast %cst_82 : f32 to vector<2x64xf32>
    %c0_83 = arith.constant 0 : index
    %c0_84 = arith.constant 0 : index
    %c0_85 = arith.constant 0 : index
    %97 = vector.load %arg13[%c0_83, %c0_84, %c0_85] : memref<8x2x512xf32, #tpu.memory_space<vmem>>, vector<1x2x512xf32>
    %98 = vector.shape_cast %97 : vector<1x2x512xf32> to vector<2x512xf32>
    %99 = arith.truncf %96 : vector<2x64xf32> to vector<2x64xbf16>
    %cst_86 = arith.constant dense<0.000000e+00> : vector<2x512xf32>
    %100 = tpu.matmul %99, %90, %cst_86 {dimension_numbers = #tpu.dot_dimension_numbers<[1], [0], [0], [1], [0, 0, 1, 1], [], []>} : vector<2x64xbf16>, vector<64x512xbf16>, vector<2x512xf32> -> vector<2x512xf32>
    %101 = arith.addf %98, %100 : vector<2x512xf32>
    %102 = vector.extract_strided_slice %101 {offsets = [0, 0], sizes = [2, 64], strides = [1, 1]} : vector<2x512xf32> to vector<2x64xf32>
    %103 = arith.negf %102 : vector<2x64xf32>
    %104 = math.exp %103 : vector<2x64xf32>
    %cst_87 = arith.constant 1.000000e+00 : f32
    %105 = vector.broadcast %cst_87 : f32 to vector<2x64xf32>
    %106 = arith.addf %105, %104 : vector<2x64xf32>
    %107 = arith.divf %105, %106 : vector<2x64xf32>
    %108 = vector.extract_strided_slice %101 {offsets = [0, 128], sizes = [2, 64], strides = [1, 1]} : vector<2x512xf32> to vector<2x64xf32>
    %109 = arith.negf %108 : vector<2x64xf32>
    %110 = math.exp %109 : vector<2x64xf32>
    %cst_88 = arith.constant 1.000000e+00 : f32
    %111 = vector.broadcast %cst_88 : f32 to vector<2x64xf32>
    %112 = arith.addf %111, %110 : vector<2x64xf32>
    %113 = arith.divf %111, %112 : vector<2x64xf32>
    %114 = vector.extract_strided_slice %101 {offsets = [0, 256], sizes = [2, 64], strides = [1, 1]} : vector<2x512xf32> to vector<2x64xf32>
    %115 = math.tanh %114 : vector<2x64xf32>
    %116 = vector.extract_strided_slice %101 {offsets = [0, 384], sizes = [2, 64], strides = [1, 1]} : vector<2x512xf32> to vector<2x64xf32>
    %117 = arith.negf %116 : vector<2x64xf32>
    %118 = math.exp %117 : vector<2x64xf32>
    %cst_89 = arith.constant 1.000000e+00 : f32
    %119 = vector.broadcast %cst_89 : f32 to vector<2x64xf32>
    %120 = arith.addf %119, %118 : vector<2x64xf32>
    %121 = arith.divf %119, %120 : vector<2x64xf32>
    %122 = arith.mulf %113, %95 : vector<2x64xf32>
    %123 = arith.mulf %107, %115 : vector<2x64xf32>
    %124 = arith.addf %122, %123 : vector<2x64xf32>
    %125 = math.tanh %124 : vector<2x64xf32>
    %126 = arith.mulf %121, %125 : vector<2x64xf32>
    %c1_90 = arith.constant 1 : index
    %c0_91 = arith.constant 0 : index
    %c0_92 = arith.constant 0 : index
    %127 = vector.load %arg13[%c1_90, %c0_91, %c0_92] : memref<8x2x512xf32, #tpu.memory_space<vmem>>, vector<1x2x512xf32>
    %128 = vector.shape_cast %127 : vector<1x2x512xf32> to vector<2x512xf32>
    %129 = arith.truncf %126 : vector<2x64xf32> to vector<2x64xbf16>
    %cst_93 = arith.constant dense<0.000000e+00> : vector<2x512xf32>
    %130 = tpu.matmul %129, %90, %cst_93 {dimension_numbers = #tpu.dot_dimension_numbers<[1], [0], [0], [1], [0, 0, 1, 1], [], []>} : vector<2x64xbf16>, vector<64x512xbf16>, vector<2x512xf32> -> vector<2x512xf32>
    %131 = arith.addf %128, %130 : vector<2x512xf32>
    %132 = vector.extract_strided_slice %131 {offsets = [0, 0], sizes = [2, 64], strides = [1, 1]} : vector<2x512xf32> to vector<2x64xf32>
    %133 = arith.negf %132 : vector<2x64xf32>
    %134 = math.exp %133 : vector<2x64xf32>
    %cst_94 = arith.constant 1.000000e+00 : f32
    %135 = vector.broadcast %cst_94 : f32 to vector<2x64xf32>
    %136 = arith.addf %135, %134 : vector<2x64xf32>
    %137 = arith.divf %135, %136 : vector<2x64xf32>
    %138 = vector.extract_strided_slice %131 {offsets = [0, 128], sizes = [2, 64], strides = [1, 1]} : vector<2x512xf32> to vector<2x64xf32>
    %139 = arith.negf %138 : vector<2x64xf32>
    %140 = math.exp %139 : vector<2x64xf32>
    %cst_95 = arith.constant 1.000000e+00 : f32
    %141 = vector.broadcast %cst_95 : f32 to vector<2x64xf32>
    %142 = arith.addf %141, %140 : vector<2x64xf32>
    %143 = arith.divf %141, %142 : vector<2x64xf32>
    %144 = vector.extract_strided_slice %131 {offsets = [0, 256], sizes = [2, 64], strides = [1, 1]} : vector<2x512xf32> to vector<2x64xf32>
    %145 = math.tanh %144 : vector<2x64xf32>
    %146 = vector.extract_strided_slice %131 {offsets = [0, 384], sizes = [2, 64], strides = [1, 1]} : vector<2x512xf32> to vector<2x64xf32>
    %147 = arith.negf %146 : vector<2x64xf32>
    %148 = math.exp %147 : vector<2x64xf32>
    %cst_96 = arith.constant 1.000000e+00 : f32
    %149 = vector.broadcast %cst_96 : f32 to vector<2x64xf32>
    %150 = arith.addf %149, %148 : vector<2x64xf32>
    %151 = arith.divf %149, %150 : vector<2x64xf32>
    %152 = arith.mulf %143, %124 : vector<2x64xf32>
    %153 = arith.mulf %137, %145 : vector<2x64xf32>
    %154 = arith.addf %152, %153 : vector<2x64xf32>
    %155 = math.tanh %154 : vector<2x64xf32>
    %156 = arith.mulf %151, %155 : vector<2x64xf32>
    %c2_97 = arith.constant 2 : index
    %c0_98 = arith.constant 0 : index
    %c0_99 = arith.constant 0 : index
    %157 = vector.load %arg13[%c2_97, %c0_98, %c0_99] : memref<8x2x512xf32, #tpu.memory_space<vmem>>, vector<1x2x512xf32>
    %158 = vector.shape_cast %157 : vector<1x2x512xf32> to vector<2x512xf32>
    %159 = arith.truncf %156 : vector<2x64xf32> to vector<2x64xbf16>
    %cst_100 = arith.constant dense<0.000000e+00> : vector<2x512xf32>
    %160 = tpu.matmul %159, %90, %cst_100 {dimension_numbers = #tpu.dot_dimension_numbers<[1], [0], [0], [1], [0, 0, 1, 1], [], []>} : vector<2x64xbf16>, vector<64x512xbf16>, vector<2x512xf32> -> vector<2x512xf32>
    %161 = arith.addf %158, %160 : vector<2x512xf32>
    %162 = vector.extract_strided_slice %161 {offsets = [0, 0], sizes = [2, 64], strides = [1, 1]} : vector<2x512xf32> to vector<2x64xf32>
    %163 = arith.negf %162 : vector<2x64xf32>
    %164 = math.exp %163 : vector<2x64xf32>
    %cst_101 = arith.constant 1.000000e+00 : f32
    %165 = vector.broadcast %cst_101 : f32 to vector<2x64xf32>
    %166 = arith.addf %165, %164 : vector<2x64xf32>
    %167 = arith.divf %165, %166 : vector<2x64xf32>
    %168 = vector.extract_strided_slice %161 {offsets = [0, 128], sizes = [2, 64], strides = [1, 1]} : vector<2x512xf32> to vector<2x64xf32>
    %169 = arith.negf %168 : vector<2x64xf32>
    %170 = math.exp %169 : vector<2x64xf32>
    %cst_102 = arith.constant 1.000000e+00 : f32
    %171 = vector.broadcast %cst_102 : f32 to vector<2x64xf32>
    %172 = arith.addf %171, %170 : vector<2x64xf32>
    %173 = arith.divf %171, %172 : vector<2x64xf32>
    %174 = vector.extract_strided_slice %161 {offsets = [0, 256], sizes = [2, 64], strides = [1, 1]} : vector<2x512xf32> to vector<2x64xf32>
    %175 = math.tanh %174 : vector<2x64xf32>
    %176 = vector.extract_strided_slice %161 {offsets = [0, 384], sizes = [2, 64], strides = [1, 1]} : vector<2x512xf32> to vector<2x64xf32>
    %177 = arith.negf %176 : vector<2x64xf32>
    %178 = math.exp %177 : vector<2x64xf32>
    %cst_103 = arith.constant 1.000000e+00 : f32
    %179 = vector.broadcast %cst_103 : f32 to vector<2x64xf32>
    %180 = arith.addf %179, %178 : vector<2x64xf32>
    %181 = arith.divf %179, %180 : vector<2x64xf32>
    %182 = arith.mulf %173, %154 : vector<2x64xf32>
    %183 = arith.mulf %167, %175 : vector<2x64xf32>
    %184 = arith.addf %182, %183 : vector<2x64xf32>
    %185 = math.tanh %184 : vector<2x64xf32>
    %186 = arith.mulf %181, %185 : vector<2x64xf32>
    %c3_104 = arith.constant 3 : index
    %c0_105 = arith.constant 0 : index
    %c0_106 = arith.constant 0 : index
    %187 = vector.load %arg13[%c3_104, %c0_105, %c0_106] : memref<8x2x512xf32, #tpu.memory_space<vmem>>, vector<1x2x512xf32>
    %188 = vector.shape_cast %187 : vector<1x2x512xf32> to vector<2x512xf32>
    %189 = arith.truncf %186 : vector<2x64xf32> to vector<2x64xbf16>
    %cst_107 = arith.constant dense<0.000000e+00> : vector<2x512xf32>
    %190 = tpu.matmul %189, %90, %cst_107 {dimension_numbers = #tpu.dot_dimension_numbers<[1], [0], [0], [1], [0, 0, 1, 1], [], []>} : vector<2x64xbf16>, vector<64x512xbf16>, vector<2x512xf32> -> vector<2x512xf32>
    %191 = arith.addf %188, %190 : vector<2x512xf32>
    %192 = vector.extract_strided_slice %191 {offsets = [0, 0], sizes = [2, 64], strides = [1, 1]} : vector<2x512xf32> to vector<2x64xf32>
    %193 = arith.negf %192 : vector<2x64xf32>
    %194 = math.exp %193 : vector<2x64xf32>
    %cst_108 = arith.constant 1.000000e+00 : f32
    %195 = vector.broadcast %cst_108 : f32 to vector<2x64xf32>
    %196 = arith.addf %195, %194 : vector<2x64xf32>
    %197 = arith.divf %195, %196 : vector<2x64xf32>
    %198 = vector.extract_strided_slice %191 {offsets = [0, 128], sizes = [2, 64], strides = [1, 1]} : vector<2x512xf32> to vector<2x64xf32>
    %199 = arith.negf %198 : vector<2x64xf32>
    %200 = math.exp %199 : vector<2x64xf32>
    %cst_109 = arith.constant 1.000000e+00 : f32
    %201 = vector.broadcast %cst_109 : f32 to vector<2x64xf32>
    %202 = arith.addf %201, %200 : vector<2x64xf32>
    %203 = arith.divf %201, %202 : vector<2x64xf32>
    %204 = vector.extract_strided_slice %191 {offsets = [0, 256], sizes = [2, 64], strides = [1, 1]} : vector<2x512xf32> to vector<2x64xf32>
    %205 = math.tanh %204 : vector<2x64xf32>
    %206 = vector.extract_strided_slice %191 {offsets = [0, 384], sizes = [2, 64], strides = [1, 1]} : vector<2x512xf32> to vector<2x64xf32>
    %207 = arith.negf %206 : vector<2x64xf32>
    %208 = math.exp %207 : vector<2x64xf32>
    %cst_110 = arith.constant 1.000000e+00 : f32
    %209 = vector.broadcast %cst_110 : f32 to vector<2x64xf32>
    %210 = arith.addf %209, %208 : vector<2x64xf32>
    %211 = arith.divf %209, %210 : vector<2x64xf32>
    %212 = arith.mulf %203, %184 : vector<2x64xf32>
    %213 = arith.mulf %197, %205 : vector<2x64xf32>
    %214 = arith.addf %212, %213 : vector<2x64xf32>
    %215 = math.tanh %214 : vector<2x64xf32>
    %216 = arith.mulf %211, %215 : vector<2x64xf32>
    %c4_111 = arith.constant 4 : index
    %c0_112 = arith.constant 0 : index
    %c0_113 = arith.constant 0 : index
    %217 = vector.load %arg13[%c4_111, %c0_112, %c0_113] : memref<8x2x512xf32, #tpu.memory_space<vmem>>, vector<1x2x512xf32>
    %218 = vector.shape_cast %217 : vector<1x2x512xf32> to vector<2x512xf32>
    %219 = arith.truncf %216 : vector<2x64xf32> to vector<2x64xbf16>
    %cst_114 = arith.constant dense<0.000000e+00> : vector<2x512xf32>
    %220 = tpu.matmul %219, %90, %cst_114 {dimension_numbers = #tpu.dot_dimension_numbers<[1], [0], [0], [1], [0, 0, 1, 1], [], []>} : vector<2x64xbf16>, vector<64x512xbf16>, vector<2x512xf32> -> vector<2x512xf32>
    %221 = arith.addf %218, %220 : vector<2x512xf32>
    %222 = vector.extract_strided_slice %221 {offsets = [0, 0], sizes = [2, 64], strides = [1, 1]} : vector<2x512xf32> to vector<2x64xf32>
    %223 = arith.negf %222 : vector<2x64xf32>
    %224 = math.exp %223 : vector<2x64xf32>
    %cst_115 = arith.constant 1.000000e+00 : f32
    %225 = vector.broadcast %cst_115 : f32 to vector<2x64xf32>
    %226 = arith.addf %225, %224 : vector<2x64xf32>
    %227 = arith.divf %225, %226 : vector<2x64xf32>
    %228 = vector.extract_strided_slice %221 {offsets = [0, 128], sizes = [2, 64], strides = [1, 1]} : vector<2x512xf32> to vector<2x64xf32>
    %229 = arith.negf %228 : vector<2x64xf32>
    %230 = math.exp %229 : vector<2x64xf32>
    %cst_116 = arith.constant 1.000000e+00 : f32
    %231 = vector.broadcast %cst_116 : f32 to vector<2x64xf32>
    %232 = arith.addf %231, %230 : vector<2x64xf32>
    %233 = arith.divf %231, %232 : vector<2x64xf32>
    %234 = vector.extract_strided_slice %221 {offsets = [0, 256], sizes = [2, 64], strides = [1, 1]} : vector<2x512xf32> to vector<2x64xf32>
    %235 = math.tanh %234 : vector<2x64xf32>
    %236 = vector.extract_strided_slice %221 {offsets = [0, 384], sizes = [2, 64], strides = [1, 1]} : vector<2x512xf32> to vector<2x64xf32>
    %237 = arith.negf %236 : vector<2x64xf32>
    %238 = math.exp %237 : vector<2x64xf32>
    %cst_117 = arith.constant 1.000000e+00 : f32
    %239 = vector.broadcast %cst_117 : f32 to vector<2x64xf32>
    %240 = arith.addf %239, %238 : vector<2x64xf32>
    %241 = arith.divf %239, %240 : vector<2x64xf32>
    %242 = arith.mulf %233, %214 : vector<2x64xf32>
    %243 = arith.mulf %227, %235 : vector<2x64xf32>
    %244 = arith.addf %242, %243 : vector<2x64xf32>
    %245 = math.tanh %244 : vector<2x64xf32>
    %246 = arith.mulf %241, %245 : vector<2x64xf32>
    %c5_118 = arith.constant 5 : index
    %c0_119 = arith.constant 0 : index
    %c0_120 = arith.constant 0 : index
    %247 = vector.load %arg13[%c5_118, %c0_119, %c0_120] : memref<8x2x512xf32, #tpu.memory_space<vmem>>, vector<1x2x512xf32>
    %248 = vector.shape_cast %247 : vector<1x2x512xf32> to vector<2x512xf32>
    %249 = arith.truncf %246 : vector<2x64xf32> to vector<2x64xbf16>
    %cst_121 = arith.constant dense<0.000000e+00> : vector<2x512xf32>
    %250 = tpu.matmul %249, %90, %cst_121 {dimension_numbers = #tpu.dot_dimension_numbers<[1], [0], [0], [1], [0, 0, 1, 1], [], []>} : vector<2x64xbf16>, vector<64x512xbf16>, vector<2x512xf32> -> vector<2x512xf32>
    %251 = arith.addf %248, %250 : vector<2x512xf32>
    %252 = vector.extract_strided_slice %251 {offsets = [0, 0], sizes = [2, 64], strides = [1, 1]} : vector<2x512xf32> to vector<2x64xf32>
    %253 = arith.negf %252 : vector<2x64xf32>
    %254 = math.exp %253 : vector<2x64xf32>
    %cst_122 = arith.constant 1.000000e+00 : f32
    %255 = vector.broadcast %cst_122 : f32 to vector<2x64xf32>
    %256 = arith.addf %255, %254 : vector<2x64xf32>
    %257 = arith.divf %255, %256 : vector<2x64xf32>
    %258 = vector.extract_strided_slice %251 {offsets = [0, 128], sizes = [2, 64], strides = [1, 1]} : vector<2x512xf32> to vector<2x64xf32>
    %259 = arith.negf %258 : vector<2x64xf32>
    %260 = math.exp %259 : vector<2x64xf32>
    %cst_123 = arith.constant 1.000000e+00 : f32
    %261 = vector.broadcast %cst_123 : f32 to vector<2x64xf32>
    %262 = arith.addf %261, %260 : vector<2x64xf32>
    %263 = arith.divf %261, %262 : vector<2x64xf32>
    %264 = vector.extract_strided_slice %251 {offsets = [0, 256], sizes = [2, 64], strides = [1, 1]} : vector<2x512xf32> to vector<2x64xf32>
    %265 = math.tanh %264 : vector<2x64xf32>
    %266 = vector.extract_strided_slice %251 {offsets = [0, 384], sizes = [2, 64], strides = [1, 1]} : vector<2x512xf32> to vector<2x64xf32>
    %267 = arith.negf %266 : vector<2x64xf32>
    %268 = math.exp %267 : vector<2x64xf32>
    %cst_124 = arith.constant 1.000000e+00 : f32
    %269 = vector.broadcast %cst_124 : f32 to vector<2x64xf32>
    %270 = arith.addf %269, %268 : vector<2x64xf32>
    %271 = arith.divf %269, %270 : vector<2x64xf32>
    %272 = arith.mulf %263, %244 : vector<2x64xf32>
    %273 = arith.mulf %257, %265 : vector<2x64xf32>
    %274 = arith.addf %272, %273 : vector<2x64xf32>
    %275 = math.tanh %274 : vector<2x64xf32>
    %276 = arith.mulf %271, %275 : vector<2x64xf32>
    %c6_125 = arith.constant 6 : index
    %c0_126 = arith.constant 0 : index
    %c0_127 = arith.constant 0 : index
    %277 = vector.load %arg13[%c6_125, %c0_126, %c0_127] : memref<8x2x512xf32, #tpu.memory_space<vmem>>, vector<1x2x512xf32>
    %278 = vector.shape_cast %277 : vector<1x2x512xf32> to vector<2x512xf32>
    %279 = arith.truncf %276 : vector<2x64xf32> to vector<2x64xbf16>
    %cst_128 = arith.constant dense<0.000000e+00> : vector<2x512xf32>
    %280 = tpu.matmul %279, %90, %cst_128 {dimension_numbers = #tpu.dot_dimension_numbers<[1], [0], [0], [1], [0, 0, 1, 1], [], []>} : vector<2x64xbf16>, vector<64x512xbf16>, vector<2x512xf32> -> vector<2x512xf32>
    %281 = arith.addf %278, %280 : vector<2x512xf32>
    %282 = vector.extract_strided_slice %281 {offsets = [0, 0], sizes = [2, 64], strides = [1, 1]} : vector<2x512xf32> to vector<2x64xf32>
    %283 = arith.negf %282 : vector<2x64xf32>
    %284 = math.exp %283 : vector<2x64xf32>
    %cst_129 = arith.constant 1.000000e+00 : f32
    %285 = vector.broadcast %cst_129 : f32 to vector<2x64xf32>
    %286 = arith.addf %285, %284 : vector<2x64xf32>
    %287 = arith.divf %285, %286 : vector<2x64xf32>
    %288 = vector.extract_strided_slice %281 {offsets = [0, 128], sizes = [2, 64], strides = [1, 1]} : vector<2x512xf32> to vector<2x64xf32>
    %289 = arith.negf %288 : vector<2x64xf32>
    %290 = math.exp %289 : vector<2x64xf32>
    %cst_130 = arith.constant 1.000000e+00 : f32
    %291 = vector.broadcast %cst_130 : f32 to vector<2x64xf32>
    %292 = arith.addf %291, %290 : vector<2x64xf32>
    %293 = arith.divf %291, %292 : vector<2x64xf32>
    %294 = vector.extract_strided_slice %281 {offsets = [0, 256], sizes = [2, 64], strides = [1, 1]} : vector<2x512xf32> to vector<2x64xf32>
    %295 = math.tanh %294 : vector<2x64xf32>
    %296 = vector.extract_strided_slice %281 {offsets = [0, 384], sizes = [2, 64], strides = [1, 1]} : vector<2x512xf32> to vector<2x64xf32>
    %297 = arith.negf %296 : vector<2x64xf32>
    %298 = math.exp %297 : vector<2x64xf32>
    %cst_131 = arith.constant 1.000000e+00 : f32
    %299 = vector.broadcast %cst_131 : f32 to vector<2x64xf32>
    %300 = arith.addf %299, %298 : vector<2x64xf32>
    %301 = arith.divf %299, %300 : vector<2x64xf32>
    %302 = arith.mulf %293, %274 : vector<2x64xf32>
    %303 = arith.mulf %287, %295 : vector<2x64xf32>
    %304 = arith.addf %302, %303 : vector<2x64xf32>
    %305 = math.tanh %304 : vector<2x64xf32>
    %306 = arith.mulf %301, %305 : vector<2x64xf32>
    %c7_132 = arith.constant 7 : index
    %c0_133 = arith.constant 0 : index
    %c0_134 = arith.constant 0 : index
    %307 = vector.load %arg13[%c7_132, %c0_133, %c0_134] : memref<8x2x512xf32, #tpu.memory_space<vmem>>, vector<1x2x512xf32>
    %308 = vector.shape_cast %307 : vector<1x2x512xf32> to vector<2x512xf32>
    %309 = arith.truncf %306 : vector<2x64xf32> to vector<2x64xbf16>
    %cst_135 = arith.constant dense<0.000000e+00> : vector<2x512xf32>
    %310 = tpu.matmul %309, %90, %cst_135 {dimension_numbers = #tpu.dot_dimension_numbers<[1], [0], [0], [1], [0, 0, 1, 1], [], []>} : vector<2x64xbf16>, vector<64x512xbf16>, vector<2x512xf32> -> vector<2x512xf32>
    %311 = arith.addf %308, %310 : vector<2x512xf32>
    %312 = vector.extract_strided_slice %311 {offsets = [0, 0], sizes = [2, 64], strides = [1, 1]} : vector<2x512xf32> to vector<2x64xf32>
    %313 = arith.negf %312 : vector<2x64xf32>
    %314 = math.exp %313 : vector<2x64xf32>
    %cst_136 = arith.constant 1.000000e+00 : f32
    %315 = vector.broadcast %cst_136 : f32 to vector<2x64xf32>
    %316 = arith.addf %315, %314 : vector<2x64xf32>
    %317 = arith.divf %315, %316 : vector<2x64xf32>
    %318 = vector.extract_strided_slice %311 {offsets = [0, 128], sizes = [2, 64], strides = [1, 1]} : vector<2x512xf32> to vector<2x64xf32>
    %319 = arith.negf %318 : vector<2x64xf32>
    %320 = math.exp %319 : vector<2x64xf32>
    %cst_137 = arith.constant 1.000000e+00 : f32
    %321 = vector.broadcast %cst_137 : f32 to vector<2x64xf32>
    %322 = arith.addf %321, %320 : vector<2x64xf32>
    %323 = arith.divf %321, %322 : vector<2x64xf32>
    %324 = vector.extract_strided_slice %311 {offsets = [0, 256], sizes = [2, 64], strides = [1, 1]} : vector<2x512xf32> to vector<2x64xf32>
    %325 = math.tanh %324 : vector<2x64xf32>
    %326 = vector.extract_strided_slice %311 {offsets = [0, 384], sizes = [2, 64], strides = [1, 1]} : vector<2x512xf32> to vector<2x64xf32>
    %327 = arith.negf %326 : vector<2x64xf32>
    %328 = math.exp %327 : vector<2x64xf32>
    %cst_138 = arith.constant 1.000000e+00 : f32
    %329 = vector.broadcast %cst_138 : f32 to vector<2x64xf32>
    %330 = arith.addf %329, %328 : vector<2x64xf32>
    %331 = arith.divf %329, %330 : vector<2x64xf32>
    %332 = arith.mulf %323, %304 : vector<2x64xf32>
    %333 = arith.mulf %317, %325 : vector<2x64xf32>
    %334 = arith.addf %332, %333 : vector<2x64xf32>
    %335 = math.tanh %334 : vector<2x64xf32>
    %336 = arith.mulf %331, %335 : vector<2x64xf32>
    %337 = tpu.concatenate %126, %156, %186, %216, %246, %276, %306, %336 in 1 : vector<2x64xf32>, vector<2x64xf32>, vector<2x64xf32>, vector<2x64xf32>, vector<2x64xf32>, vector<2x64xf32>, vector<2x64xf32>, vector<2x64xf32> -> vector<2x512xf32>
    %338 = arith.truncf %337 : vector<2x512xf32> to vector<2x512xbf16>
    %c0_139 = arith.constant 0 : index
    %c0_140 = arith.constant 0 : index
    %339 = vector.load %arg5[%c0_139, %c0_140] : memref<512x256xbf16, #tpu.memory_space<vmem>>, vector<512x256xbf16>
    %cst_141 = arith.constant dense<0.000000e+00> : vector<2x256xf32>
    %340 = tpu.matmul %338, %339, %cst_141 {dimension_numbers = #tpu.dot_dimension_numbers<[1], [0], [0], [1], [0, 0, 1, 1], [], []>} : vector<2x512xbf16>, vector<512x256xbf16>, vector<2x256xf32> -> vector<2x256xf32>
    %341 = vector.extract_strided_slice %340 {offsets = [0, 224], sizes = [2, 16], strides = [1, 1]} : vector<2x256xf32> to vector<2x16xf32>
    %342 = vector.extract_strided_slice %340 {offsets = [0, 16], sizes = [2, 16], strides = [1, 1]} : vector<2x256xf32> to vector<2x16xf32>
    %c0_142 = arith.constant 0 : index
    %c0_143 = arith.constant 0 : index
    %343 = vector.load %arg9[%c0_142, %c0_143] : memref<6x256xf32, #tpu.memory_space<vmem>>, vector<6x256xf32>
    %344 = vector.extract_strided_slice %343 {offsets = [0, 0], sizes = [1, 256], strides = [1, 1]} : vector<6x256xf32> to vector<1x256xf32>
    %345 = vector.extract_strided_slice %343 {offsets = [1, 0], sizes = [1, 256], strides = [1, 1]} : vector<6x256xf32> to vector<1x256xf32>
    %346 = vector.extract_strided_slice %343 {offsets = [2, 0], sizes = [1, 256], strides = [1, 1]} : vector<6x256xf32> to vector<1x256xf32>
    %347 = vector.extract_strided_slice %343 {offsets = [3, 0], sizes = [1, 256], strides = [1, 1]} : vector<6x256xf32> to vector<1x256xf32>
    %348 = vector.extract_strided_slice %343 {offsets = [4, 0], sizes = [1, 256], strides = [1, 1]} : vector<6x256xf32> to vector<1x256xf32>
    %349 = vector.extract_strided_slice %343 {offsets = [5, 0], sizes = [1, 64], strides = [1, 1]} : vector<6x256xf32> to vector<1x64xf32>
    %cst_144 = arith.constant dense<0.000000e+00> : vector<256xf32>
    %350 = vector.multi_reduction <add>, %340, %cst_144 [0] : vector<2x256xf32> to vector<256xf32>
    %351 = vector.shape_cast %350 : vector<256xf32> to vector<1x256xf32>
    %cst_145 = arith.constant 2.000000e+00 : f32
    %352 = vector.broadcast %cst_145 : f32 to vector<1x256xf32>
    %353 = arith.divf %351, %352 : vector<1x256xf32>
    %354 = vector.broadcast %353 : vector<1x256xf32> to vector<2x256xf32>
    %355 = arith.subf %340, %354 : vector<2x256xf32>
    %356 = arith.mulf %355, %355 : vector<2x256xf32>
    %cst_146 = arith.constant dense<0.000000e+00> : vector<256xf32>
    %357 = vector.multi_reduction <add>, %356, %cst_146 [0] : vector<2x256xf32> to vector<256xf32>
    %358 = vector.shape_cast %357 : vector<256xf32> to vector<1x256xf32>
    %cst_147 = arith.constant 2.000000e+00 : f32
    %359 = vector.broadcast %cst_147 : f32 to vector<1x256xf32>
    %360 = arith.divf %358, %359 : vector<1x256xf32>
    %361 = vector.broadcast %353 : vector<1x256xf32> to vector<2x256xf32>
    %362 = arith.subf %340, %361 : vector<2x256xf32>
    %cst_148 = arith.constant 9.99999974E-6 : f32
    %363 = vector.broadcast %cst_148 : f32 to vector<1x256xf32>
    %364 = arith.addf %360, %363 : vector<1x256xf32>
    %365 = math.rsqrt %364 : vector<1x256xf32>
    %366 = vector.broadcast %365 : vector<1x256xf32> to vector<2x256xf32>
    %367 = arith.mulf %362, %366 : vector<2x256xf32>
    %368 = vector.broadcast %344 : vector<1x256xf32> to vector<2x256xf32>
    %369 = arith.mulf %367, %368 : vector<2x256xf32>
    %370 = vector.broadcast %345 : vector<1x256xf32> to vector<2x256xf32>
    %371 = arith.addf %369, %370 : vector<2x256xf32>
    %372 = arith.truncf %371 : vector<2x256xf32> to vector<2x256xbf16>
    %c0_149 = arith.constant 0 : index
    %c0_150 = arith.constant 0 : index
    %373 = vector.load %arg10[%c0_149, %c0_150] : memref<256x256xbf16, #tpu.memory_space<vmem>>, vector<256x256xbf16>
    %cst_151 = arith.constant dense<0.000000e+00> : vector<2x256xf32>
    %374 = tpu.matmul %372, %373, %cst_151 {dimension_numbers = #tpu.dot_dimension_numbers<[1], [0], [0], [1], [0, 0, 1, 1], [], []>} : vector<2x256xbf16>, vector<256x256xbf16>, vector<2x256xf32> -> vector<2x256xf32>
    %375 = vector.broadcast %346 : vector<1x256xf32> to vector<2x256xf32>
    %376 = arith.addf %374, %375 : vector<2x256xf32>
    %cst_152 = arith.constant 0.000000e+00 : f32
    %377 = vector.broadcast %cst_152 : f32 to vector<2x256xf32>
    %378 = arith.maximumf %376, %377 : vector<2x256xf32>
    %cst_153 = arith.constant dense<0.000000e+00> : vector<256xf32>
    %379 = vector.multi_reduction <add>, %378, %cst_153 [0] : vector<2x256xf32> to vector<256xf32>
    %380 = vector.shape_cast %379 : vector<256xf32> to vector<1x256xf32>
    %cst_154 = arith.constant 2.000000e+00 : f32
    %381 = vector.broadcast %cst_154 : f32 to vector<1x256xf32>
    %382 = arith.divf %380, %381 : vector<1x256xf32>
    %383 = vector.broadcast %382 : vector<1x256xf32> to vector<2x256xf32>
    %384 = arith.subf %378, %383 : vector<2x256xf32>
    %385 = arith.mulf %384, %384 : vector<2x256xf32>
    %cst_155 = arith.constant dense<0.000000e+00> : vector<256xf32>
    %386 = vector.multi_reduction <add>, %385, %cst_155 [0] : vector<2x256xf32> to vector<256xf32>
    %387 = vector.shape_cast %386 : vector<256xf32> to vector<1x256xf32>
    %cst_156 = arith.constant 2.000000e+00 : f32
    %388 = vector.broadcast %cst_156 : f32 to vector<1x256xf32>
    %389 = arith.divf %387, %388 : vector<1x256xf32>
    %390 = vector.broadcast %382 : vector<1x256xf32> to vector<2x256xf32>
    %391 = arith.subf %378, %390 : vector<2x256xf32>
    %cst_157 = arith.constant 9.99999974E-6 : f32
    %392 = vector.broadcast %cst_157 : f32 to vector<1x256xf32>
    %393 = arith.addf %389, %392 : vector<1x256xf32>
    %394 = math.rsqrt %393 : vector<1x256xf32>
    %395 = vector.broadcast %394 : vector<1x256xf32> to vector<2x256xf32>
    %396 = arith.mulf %391, %395 : vector<2x256xf32>
    %397 = vector.broadcast %347 : vector<1x256xf32> to vector<2x256xf32>
    %398 = arith.mulf %396, %397 : vector<2x256xf32>
    %399 = vector.broadcast %348 : vector<1x256xf32> to vector<2x256xf32>
    %400 = arith.addf %398, %399 : vector<2x256xf32>
    %401 = arith.truncf %400 : vector<2x256xf32> to vector<2x256xbf16>
    %c0_158 = arith.constant 0 : index
    %c0_159 = arith.constant 0 : index
    %402 = vector.load %arg11[%c0_158, %c0_159] : memref<256x64xbf16, #tpu.memory_space<vmem>>, vector<256x64xbf16>
    %cst_160 = arith.constant dense<0.000000e+00> : vector<2x64xf32>
    %403 = tpu.matmul %401, %402, %cst_160 {dimension_numbers = #tpu.dot_dimension_numbers<[1], [0], [0], [1], [0, 0, 1, 1], [], []>} : vector<2x256xbf16>, vector<256x64xbf16>, vector<2x64xf32> -> vector<2x64xf32>
    %404 = vector.broadcast %349 : vector<1x64xf32> to vector<2x64xf32>
    %405 = arith.addf %403, %404 : vector<2x64xf32>
    %c0_161 = arith.constant 0 : index
    %c0_162 = arith.constant 0 : index
    %406 = vector.load %arg8[%c0_161, %c0_162] : memref<2x64xf32, #tpu.memory_space<vmem>>, vector<2x64xf32>
    %407 = arith.addf %405, %406 : vector<2x64xf32>
    %408 = vector.extract_strided_slice %334 {offsets = [0, 0], sizes = [2, 32], strides = [1, 1]} : vector<2x64xf32> to vector<2x32xf32>
    %409 = vector.extract_strided_slice %334 {offsets = [0, 32], sizes = [2, 32], strides = [1, 1]} : vector<2x64xf32> to vector<2x32xf32>
    %cst_163 = arith.constant 0.000000e+00 : f32
    %410 = vector.broadcast %cst_163 : f32 to vector<2x96xf32>
    %411 = tpu.concatenate %407, %341, %342, %408, %409, %410 in 1 : vector<2x64xf32>, vector<2x16xf32>, vector<2x16xf32>, vector<2x32xf32>, vector<2x32xf32>, vector<2x96xf32> -> vector<2x256xf32>
    %c0_164 = arith.constant 0 : index
    %c0_165 = arith.constant 0 : index
    %412 = vector.load %arg12[%c0_164, %c0_165] : memref<2x256xf32, #tpu.memory_space<vmem>>, vector<2x256xf32>
    tpu.vector_store %arg12[%c0_164, %c0_165], %411 {strides = array<i32>} : memref<2x256xf32, #tpu.memory_space<vmem>>, vector<2x256xf32>,
    return
  }
}

</mosaic_0001>

<bundles_post_ra>
// kernel: sequential_rnn_net.1
= control target key start
LH: loop header
LB: loop body
LE: loop exit
PB: predicated region body
PF: predicated region fallthrough
CT: control target
= control target key end

     0   :  { %17 = vsyncpa [#allocation4], 0  ;;  %s5378_s0 = inlined_call_operand.vmem [shape: f32[8,2,16], index: 0, kind: input, shape index: {}]   ;;  %s5379_s1 = inlined_call_operand.hbm [shape: bf16[16,512], index: 1, kind: input, shape index: {}]   ;;  %s5380_s2 = inlined_call_operand.hbm [shape: bf16[32,512], index: 2, kind: input, shape index: {}]   ;;  %s5381_s3 = inlined_call_operand.vmem [shape: f32[1,512], index: 3, kind: input, shape index: {}]   ;;  %s5382_s4 = inlined_call_operand.hbm [shape: bf16[64,512], index: 4, kind: input, shape index: {}]   ;;  %s5383_s5 = inlined_call_operand.hbm [shape: bf16[512,256], index: 5, kind: input, shape index: {}]   ;;  %s5384_s6 = inlined_call_operand.vmem [shape: f32[2,2,16], index: 6, kind: input, shape index: {}]   ;;  %s5385_s7 = inlined_call_operand.vmem [shape: f32[2,2,32], index: 7, kind: input, shape index: {}]   ;;  %s5386_s8 = inlined_call_operand.vmem [shape: f32[2,64], index: 8, kind: input, shape index: {}]   ;;  %s5387_s9 = inlined_call_operand.hbm [shape: f32[6,256], index: 9, kind: input, shape index: {}]   ;;  %s5388_s10 = inlined_call_operand.vmem [shape: bf16[256,256], index: 10, kind: input, shape index: {}]   ;;  %s5389_s11 = inlined_call_operand.vmem [shape: bf16[256,64], index: 11, kind: input, shape index: {}]   ;;  %s5390_s12 = inlined_call_operand.vmem [shape: f32[2,256], index: 12, kind: output, shape index: {}]  }
   0x1   :  { %18 = vsyncpa [#allocation6], 0 }
   0x2   :  { %19 = vsyncpa [#allocation9], 0  ;;  %s4473_s21 = smov [#allocation5]   ;;  %s4474_s23 = smov [#allocation8]  }
   0x3   :  { %s39_s22 = sshll.u32 %s4473_s21, 4  ;;  %s65_s24 = sshll.u32 %s4474_s23, 4  ;;  %s40_s22 = int_to_ptr.vmem [resolvable:$true] %s39_s22  ;;  %s4552_s24 = int_to_ptr.vmem [resolvable:$true] %s65_s24 }
   0x4   :  { %s4357_s27 = scalar_lea.hbm %s5380_s2, 1024 }
   0x5   :  { %p4358_p0 = scmp.ne.s32.totalorder %s5380_s2, %s4357_s27  ;;  %p4361_p1 = scmp.lt.u32.totalorder %s4357_s27, %s5380_s2 }
   0x7   :  { %p4363_p2 = pnand %p4361_p1, %p4358_p0 }
   0x9   :  { %4366 = shalt.err (!%p4363_p2)
}
   0xa   :  { %s4367_s14 = scalar_lea.vmem %s40_s22, 1024  ;;  %p4372_p4 = scmp.lt.s32.totalorder %s40_s22, %s40_s22 }
   0xb   :  { %p4368_p3 = scmp.ne.s32.totalorder %s40_s22, %s4367_s14  ;;  %p4373_p5 = scmp.lt.s32.totalorder %s4367_s14, %s4367_s14 }
   0xd   :  { %p4374_p6 = por %p4373_p5, %p4372_p4 }
   0xf   :  { %p4375_p7 = pnand %p4374_p6, %p4368_p3 }
  0x11   :  { %4378 = shalt.err (!%p4375_p7)
}
  0x12   :  { %s4475_s15 = smov 256   ;;  %s4476_s16 = smov 16  }
  0x13   :  { %45 = dma.hbm_to_vmem [thread:$0]  %s5380_s2, 1024, %s40_s22, [#allocation6], %s4475_s15, %s4475_s15, %s4476_s16  }
  0x14   :  { %s4379_s21 = scalar_lea.hbm %s5383_s5, 8192 }
  0x15   :  { %p4380_p8 = scmp.ne.s32.totalorder %s5383_s5, %s4379_s21  ;;  %p4383_p9 = scmp.lt.u32.totalorder %s4379_s21, %s5383_s5 }
  0x17   :  { %p4385_p10 = pnand %p4383_p9, %p4380_p8 }
  0x19   :  { %4388 = shalt.err (!%p4385_p10)
}
  0x1a   :  { %s4389_s28 = scalar_lea.vmem %s4552_s24, 8192  ;;  %p4394_p12 = scmp.lt.s32.totalorder %s4552_s24, %s4552_s24 }
  0x1b   :  { %p4390_p11 = scmp.ne.s32.totalorder %s4552_s24, %s4389_s28  ;;  %p4395_p13 = scmp.lt.s32.totalorder %s4389_s28, %s4389_s28 }
  0x1d   :  { %p4396_p0 = por %p4395_p13, %p4394_p12 }
  0x1f   :  { %p4397_p1 = pnand %p4396_p0, %p4390_p11 }
  0x21   :  { %4400 = shalt.err (!%p4397_p1)
}
  0x22   :  { %s4477_s2 = smov 128   ;;  %s4478_s22 = smov 8  }
  0x23   :  { %71 = dma.hbm_to_vmem [thread:$0]  %s5383_s5, 8192, %s4552_s24, [#allocation9], %s4477_s2, %s4477_s2, %s4478_s22  }
  0x24   :  { %s4479_s13 = smov [#allocation3]   ;;  %s4480_s17 = smov [#allocation7]  }
  0x25   :  { %s27_s14 = sshll.u32 %s4479_s13, 4  ;;  %s53_s18 = sshll.u32 %s4480_s17, 4  ;;  %s28_s14 = int_to_ptr.vmem [resolvable:$true] %s27_s14  ;;  %s4586_s18 = int_to_ptr.vmem [resolvable:$true] %s53_s18 }
  0x26   :  { %s4401_s21 = scalar_lea.hbm %s5379_s1, 512 }
  0x27   :  { %p4402_p2 = scmp.ne.s32.totalorder %s5379_s1, %s4401_s21  ;;  %p4405_p3 = scmp.lt.u32.totalorder %s4401_s21, %s5379_s1 }
  0x29   :  { %p4407_p4 = pnand %p4405_p3, %p4402_p2 }
  0x2b   :  { %4410 = shalt.err (!%p4407_p4)
}
  0x2c   :  { %s4411_s5 = scalar_lea.vmem %s28_s14, 512  ;;  %p4416_p6 = scmp.lt.s32.totalorder %s28_s14, %s28_s14 }
  0x2d   :  { %p4412_p5 = scmp.ne.s32.totalorder %s28_s14, %s4411_s5  ;;  %p4417_p7 = scmp.lt.s32.totalorder %s4411_s5, %s4411_s5 }
  0x2f   :  { %p4418_p8 = por %p4417_p7, %p4416_p6 }
  0x31   :  { %p4419_p9 = pnand %p4418_p8, %p4412_p5 }
  0x33   :  { %4422 = shalt.err (!%p4419_p9)
}
  0x34   :  { %33 = dma.hbm_to_vmem [thread:$0]  %s5379_s1, 512, %s28_s14, [#allocation4], %s4475_s15, %s4475_s15, %s4476_s16  }
  0x35   :  { %s4423_s29 = scalar_lea.hbm %s5382_s4, 2048 }
  0x36   :  { %p4424_p10 = scmp.ne.s32.totalorder %s5382_s4, %s4423_s29  ;;  %p4427_p11 = scmp.lt.u32.totalorder %s4423_s29, %s5382_s4 }
  0x38   :  { %p4429_p12 = pnand %p4427_p11, %p4424_p10 }
  0x3a   :  { %4432 = shalt.err (!%p4429_p12)
}
  0x3b   :  { %s4433_s20 = scalar_lea.vmem %s4586_s18, 2048  ;;  %p4438_p0 = scmp.lt.s32.totalorder %s4586_s18, %s4586_s18 }
  0x3c   :  { %p4434_p13 = scmp.ne.s32.totalorder %s4586_s18, %s4433_s20  ;;  %p4439_p1 = scmp.lt.s32.totalorder %s4433_s20, %s4433_s20 }
  0x3e   :  { %p4440_p2 = por %p4439_p1, %p4438_p0 }
  0x40   :  { %p4441_p3 = pnand %p4440_p2, %p4434_p13 }
  0x42   :  { %4444 = shalt.err (!%p4441_p3)
}
  0x43   :  { %59 = dma.hbm_to_vmem [thread:$0]  %s5382_s4, 2048, %s4586_s18, [#allocation6], %s4475_s15, %s4475_s15, %s4476_s16  }
  0x44   :  { %s4481_s21 = smov [#allocation10]   ;;  %s4445_s27 = scalar_lea.hbm %s5387_s9, 256 }
  0x45   :  { %s84_s23 = sshll.u32 %s4481_s21, 4  ;;  %p4446_p4 = scmp.ne.s32.totalorder %s5387_s9, %s4445_s27  ;;  %s85_s23 = int_to_ptr.vmem [resolvable:$true] %s84_s23 }
  0x46   :  { %p4449_p5 = scmp.lt.u32.totalorder %s4445_s27, %s5387_s9 }
  0x48   :  { %p4451_p6 = pnand %p4449_p5, %p4446_p4 }
  0x4a   :  { %4454 = shalt.err (!%p4451_p6)
}
  0x4b   :  { %s4455_s22 = scalar_lea.vmem %s85_s23, 256  ;;  %p4460_p8 = scmp.lt.s32.totalorder %s85_s23, %s85_s23 }
  0x4c   :  { %p4456_p7 = scmp.ne.s32.totalorder %s85_s23, %s4455_s22  ;;  %p4461_p9 = scmp.lt.s32.totalorder %s4455_s22, %s4455_s22 }
  0x4e   :  { %p4462_p10 = por %p4461_p9, %p4460_p8 }
  0x50   :  { %p4463_p11 = pnand %p4462_p10, %p4456_p7 }
  0x52   :  { %4466 = shalt.err (!%p4463_p11)
}
  0x53   :  { %87 = dma.hbm_to_vmem [thread:$0]  %s5387_s9, 256, %s85_s23, [#allocation9]  }
  0x54   :  { %4467 = dma.done.wait [#allocation4], 512  }
  0x55   :  { %4468 = vsyncadd [#allocation4], 4294966784 }
  0x56   :  { %4469 = dma.done.wait [#allocation6], 3072  }
  0x57   :  { %4470 = vsyncadd [#allocation6], 4294964224 }
  0x58   :  { %4471 = dma.done.wait [#allocation9], 8448  }
  0x59   :  { %4472 = vsyncadd [#allocation9], 4294958848  ;;  %v4482_v0 = vmov 0   ;;  %v3707_v1 = vld [vmem:[%s5384_s6 + $0x2] sm:$0x3]  ;;  %vm115_vm0 = vcmask 130048   ;;  %v260_v51 = vlaneseq }
  0x5a   :  { %202 = vmatprep.mubr.bf16.mxu0 %v4482_v0  ;;  %243 = vmatprep.mubr.bf16.mxu1 %v4482_v0  ;;  %v4003_v2 = vld [vmem:[#allocation5 + $0xc] ss:$16 sps:$4 sm:$0xff]   ;;  %v4005_v3 = vld [vmem:[#allocation5 + $0x4] ss:$16 sps:$4 sm:$0xff]   ;;  %v4007_v4 = vld [vmem:[#allocation5 + $0x8] ss:$16 sps:$4 sm:$0xff]  }
  0x5b   :  { %112 = vrot.lane.b32.xlu0 %v3707_v1, %s4476_s16  ;;  %v4008_v5 = vld [vmem:[#allocation5] ss:$16 sps:$4 sm:$0xff]   ;;  %211 = vmatprep.subr.bf16.mxu1 %v4003_v2  ;;  %v4009_v6 = vld [vmem:[#allocation5 + $0x2c] ss:$16 sps:$4 sm:$0xff]   ;;  %v4011_v7 = vld [vmem:[#allocation5 + $0x24] ss:$16 sps:$4 sm:$0xff]  }
  0x5c   :  { %170 = vmatprep.subr.bf16.mxu0 %v4005_v3  ;;  %212 = vmatpush1.bf16.msra.mxu1 %v4007_v4  ;;  %v4013_v8 = vld [vmem:[#allocation5 + $0x28] ss:$16 sps:$4 sm:$0xff]   ;;  %v4014_v9 = vld [vmem:[#allocation5 + $0x20] ss:$16 sps:$4 sm:$0xff]   ;;  %v4641_v10 = vld [vmem:[#allocation3 + $0xc] ss:$16 sps:$4 sm:$0xff]  }
  0x5d   :  { %171 = vmatpush1.bf16.msra.mxu0 %v4008_v5  ;;  %213 = vmatprep.subr.bf16.mxu1 %v4009_v6  ;;  %v4643_v11 = vld [vmem:[#allocation3 + $0x4] ss:$16 sps:$4 sm:$0xff]   ;;  %v108_v12 = vld [vmem:[%s5384_s6] sm:$0x3]  ;;  %v4651_v15 = vld [vmem:[#allocation3 + $0x8] ss:$16 sps:$4 sm:$0xff]  }
  0x5e   :  { %172 = vmatprep.subr.bf16.mxu0 %v4011_v7  ;;  %vm166_vm1 = vcmask 261120   ;;  %v4653_v16 = vld [vmem:[#allocation3] ss:$16 sps:$4 sm:$0xff]   ;;  %v3731_v22 = vld [vmem:[%s5378_s0 + $0x4] sm:$0x3]  ;;  %s4483_s22 = smov 32  }
  0x5f   :  { %v253_v18 = vld [vmem:[%s5378_s0] sm:$0x3]  ;;  %v3724_v20 = vld [vmem:[%s5378_s0 + $0x2] sm:$0x3]  ;;  %v550_v23 = vpack.c.bf16 %v3731_v22, %v3731_v22  ;;  %v3738_v24 = vld [vmem:[%s5378_s0 + $0x6] sm:$0x3] }
  0x60   :  { %214 = vmatpush1.bf16.msra.mxu1 %v4013_v8  ;;  %v254_v19 = vpack.c.bf16 %v253_v18, %v253_v18  ;;  %v414_v21 = vpack.c.bf16 %v3724_v20, %v3724_v20  ;;  %v686_v25 = vpack.c.bf16 %v3738_v24, %v3738_v24  ;;  %v3745_v26 = vld [vmem:[%s5378_s0 + $0x8] sm:$0x3]  ;;  %v3752_v28 = vld [vmem:[%s5378_s0 + $0xa] sm:$0x3]  ;;  %v3759_v30 = vld [vmem:[%s5378_s0 + $0xc] sm:$0x3] }
  0x61   :  { %173 = vmatpush1.bf16.msra.mxu0 %v4014_v9  ;;  %344 = vmatprep.subr.bf16.mxu1 %v4641_v10  ;;  %v822_v27 = vpack.c.bf16 %v3745_v26, %v3745_v26  ;;  %v958_v29 = vpack.c.bf16 %v3752_v28, %v3752_v28  ;;  %v1094_v31 = vpack.c.bf16 %v3759_v30, %v3759_v30  ;;  %v4732_v32 = vld [vmem:[#allocation7 + $0x4] ss:$16 sps:$4 sm:$0xff]   ;;  %v3766_v33 = vld [vmem:[%s5378_s0 + $0xe] sm:$0x3]  ;;  %v4745_v35 = vld [vmem:[#allocation7] ss:$16 sps:$4 sm:$0xff]  }
  0x62   :  { %303 = vmatprep.subr.bf16.mxu0 %v4643_v11  ;;  %v1230_v34 = vpack.c.bf16 %v3766_v33, %v3766_v33  ;;  %v4747_v36 = vld [vmem:[#allocation7 + $0x24] ss:$16 sps:$4 sm:$0xff]   ;;  %v4752_v37 = vld [vmem:[#allocation7 + $0x20] ss:$16 sps:$4 sm:$0xff]   ;;  %v4773_v42 = vld [vmem:[#allocation7 + $0xc] ss:$16 sps:$4 sm:$0xff]  }
  0x63   :  { %v4756_v38 = vld [vmem:[#allocation7 + $0x44] ss:$16 sps:$4 sm:$0xff]   ;;  %v4762_v39 = vld [vmem:[#allocation7 + $0x40] ss:$16 sps:$4 sm:$0xff]   ;;  %v4778_v43 = vld [vmem:[#allocation7 + $0x8] ss:$16 sps:$4 sm:$0xff]  }
  0x64   :  { %v4765_v40 = vld [vmem:[#allocation7 + $0x64] ss:$16 sps:$4 sm:$0xff]   ;;  %v4770_v41 = vld [vmem:[#allocation7 + $0x60] ss:$16 sps:$4 sm:$0xff]   ;;  %v4781_v44 = vld [vmem:[#allocation7 + $0x2c] ss:$16 sps:$4 sm:$0xff]  }
  0x65   :  { %v4787_v45 = vld [vmem:[#allocation7 + $0x28] ss:$16 sps:$4 sm:$0xff]   ;;  %v4791_v46 = vld [vmem:[#allocation7 + $0x4c] ss:$16 sps:$4 sm:$0xff]   ;;  %v3773_v50 = vld [vmem:[%s5385_s7 + $0x2] sm:$0x3] }
  0x66   :  { %v4794_v47 = vld [vmem:[#allocation7 + $0x48] ss:$16 sps:$4 sm:$0xff]   ;;  %v4797_v48 = vld [vmem:[#allocation7 + $0x6c] ss:$16 sps:$4 sm:$0xff]   ;;  %1384 = vrot.lane.b32.xlu0 %v3773_v50, %s4483_s22  ;;  %v4818_v52 = vshrl.u32 %v260_v51, 7  ;;  %vm1469_vm2 = vcmask 523264  }
  0x67   :  { %v4800_v49 = vld [vmem:[#allocation7 + $0x68] ss:$16 sps:$4 sm:$0xff]   ;;  %v252_v55 = vld [vmem:[%s5381_s3] sm:$0xf]  ;;  %v4484_v57 = vmov 1983009808  }
  0x68   :  { %v4821_v53 = vsub.s32 0, %v4818_v52  ;;  %v4824_v54 = vsub.s32 2, %v4818_v52  ;;  %v4830_v56 = vsub.s32 1, %v4818_v52  ;;  %v396_v58 = vunpack.c.l.s4 %v4484_v57  ;;  %s4486_s23 = smov 96  }
  0x69   :  { %v4833_v59 = vsub.s32 3, %v4818_v52  ;;  %vm3116_vm3 = vcmask 1041408   ;;  %vm3683_vm4 = vcmask 654336   ;;  %vm3685_vm5 = vcmask 785408  }
  0x6a   :  { %v4836_v60 = vrot.slane %v252_v55, %v4821_v53  ;;  %v4839_v61 = vrot.slane %v252_v55, %v4824_v54  ;;  %v4842_v62 = vrot.slane %v252_v55, %v4830_v56  ;;  %v397_v63 = vunpack.c.0.s8 %v396_v58 }
  0x6b   :  { %v4845_v1 = vrot.slane %v252_v55, %v4833_v59 }
  0x6c   :  { %v4851_v9 = vsub.s32 %v397_v63, %v4818_v52 }
  0xcd   :  { %v113_v13 = vpop.permute.xlu0 %112 }
  0xce   :  { %v116_v14 = vsel %vm115_vm0, %v108_v12, %v113_v13 }
  0xcf   :  { %v117_v17 = vpack.c.bf16 %v116_v14, %v116_v14 }
  0xd1   :  { %3716 = vmatmul.mubr.msk.bf16.vlgmr.msra.gmra.mrb[0].mxu0 %vm166_vm1, %v117_v17  ;;  %3717 = vmatmul.mubr.msk.bf16.vlgmr.msra.gmra.mrb[0].mxu1 %vm166_vm1, %v117_v17 }
  0xd2   :  { %345 = vmatpush1.bf16.msra.mxu1 %v4651_v15  ;;  %304 = vmatpush1.bf16.msra.mxu0 %v4653_v16 }
  0xd3   :  { %335 = vmatprep.mubr.bf16.mxu0 %v4482_v0  ;;  %376 = vmatprep.mubr.bf16.mxu1 %v4482_v0 }
  0xd4   :  { %483 = vmatprep.subr.bf16.mxu1 %v4641_v10  ;;  %442 = vmatprep.subr.bf16.mxu0 %v4643_v11 }
  0xdd   :  { %3722 = vmatmul.mubr.msk.bf16.vlgmr.msra.gmra.mrb[0].mxu0 %vm115_vm0, %v254_v19  ;;  %3723 = vmatmul.mubr.msk.bf16.vlgmr.msra.gmra.mrb[0].mxu1 %vm115_vm0, %v254_v19 }
  0xde   :  { %484 = vmatpush1.bf16.msra.mxu1 %v4651_v15  ;;  %443 = vmatpush1.bf16.msra.mxu0 %v4653_v16 }
  0xdf   :  { %474 = vmatprep.mubr.bf16.mxu0 %v4482_v0  ;;  %515 = vmatprep.mubr.bf16.mxu1 %v4482_v0 }
  0xe0   :  { %619 = vmatprep.subr.bf16.mxu1 %v4641_v10  ;;  %578 = vmatprep.subr.bf16.mxu0 %v4643_v11 }
  0xe5   :  { %3729 = vmatmul.mubr.msk.bf16.vlgmr.msra.gmra.mrb[4].mxu0 %vm115_vm0, %v414_v21  ;;  %3730 = vmatmul.mubr.msk.bf16.vlgmr.msra.gmra.mrb[4].mxu1 %vm115_vm0, %v414_v21 }
  0xe6   :  { %620 = vmatpush1.bf16.msra.mxu1 %v4651_v15  ;;  %579 = vmatpush1.bf16.msra.mxu0 %v4653_v16 }
  0xe7   :  { %610 = vmatprep.mubr.bf16.mxu0 %v4482_v0  ;;  %651 = vmatprep.mubr.bf16.mxu1 %v4482_v0 }
  0xe8   :  { %755 = vmatprep.subr.bf16.mxu1 %v4641_v10  ;;  %714 = vmatprep.subr.bf16.mxu0 %v4643_v11 }
  0xed   :  { %3736 = vmatmul.mubr.msk.bf16.vlgmr.msra.gmra.mrb[8].mxu0 %vm115_vm0, %v550_v23  ;;  %3737 = vmatmul.mubr.msk.bf16.vlgmr.msra.gmra.mrb[8].mxu1 %vm115_vm0, %v550_v23 }
  0xee   :  { %756 = vmatpush1.bf16.msra.mxu1 %v4651_v15  ;;  %715 = vmatpush1.bf16.msra.mxu0 %v4653_v16 }
  0xef   :  { %746 = vmatprep.mubr.bf16.mxu0 %v4482_v0  ;;  %787 = vmatprep.mubr.bf16.mxu1 %v4482_v0 }
  0xf0   :  { %891 = vmatprep.subr.bf16.mxu1 %v4641_v10  ;;  %850 = vmatprep.subr.bf16.mxu0 %v4643_v11 }
  0xf5   :  { %3743 = vmatmul.mubr.msk.bf16.vlgmr.msra.gmra.mrb[12].mxu0 %vm115_vm0, %v686_v25  ;;  %3744 = vmatmul.mubr.msk.bf16.vlgmr.msra.gmra.mrb[12].mxu1 %vm115_vm0, %v686_v25 }
  0xf6   :  { %892 = vmatpush1.bf16.msra.mxu1 %v4651_v15  ;;  %851 = vmatpush1.bf16.msra.mxu0 %v4653_v16 }
  0xf7   :  { %882 = vmatprep.mubr.bf16.mxu0 %v4482_v0  ;;  %923 = vmatprep.mubr.bf16.mxu1 %v4482_v0 }
  0xf8   :  { %1027 = vmatprep.subr.bf16.mxu1 %v4641_v10  ;;  %986 = vmatprep.subr.bf16.mxu0 %v4643_v11 }
  0xfd   :  { %3750 = vmatmul.mubr.msk.bf16.vlgmr.msra.gmra.mrb[16].mxu0 %vm115_vm0, %v822_v27  ;;  %3751 = vmatmul.mubr.msk.bf16.vlgmr.msra.gmra.mrb[16].mxu1 %vm115_vm0, %v822_v27 }
  0xfe   :  { %1028 = vmatpush1.bf16.msra.mxu1 %v4651_v15  ;;  %987 = vmatpush1.bf16.msra.mxu0 %v4653_v16 }
  0xff   :  { %1018 = vmatprep.mubr.bf16.mxu0 %v4482_v0  ;;  %1059 = vmatprep.mubr.bf16.mxu1 %v4482_v0 }
 0x100   :  { %1163 = vmatprep.subr.bf16.mxu1 %v4641_v10  ;;  %1122 = vmatprep.subr.bf16.mxu0 %v4643_v11 }
 0x105   :  { %3757 = vmatmul.mubr.msk.bf16.vlgmr.msra.gmra.mrb[20].mxu0 %vm115_vm0, %v958_v29  ;;  %3758 = vmatmul.mubr.msk.bf16.vlgmr.msra.gmra.mrb[20].mxu1 %vm115_vm0, %v958_v29 }
 0x106   :  { %1164 = vmatpush1.bf16.msra.mxu1 %v4651_v15  ;;  %1123 = vmatpush1.bf16.msra.mxu0 %v4653_v16 }
 0x107   :  { %1154 = vmatprep.mubr.bf16.mxu0 %v4482_v0  ;;  %1195 = vmatprep.mubr.bf16.mxu1 %v4482_v0 }
 0x108   :  { %1299 = vmatprep.subr.bf16.mxu1 %v4641_v10  ;;  %1258 = vmatprep.subr.bf16.mxu0 %v4643_v11 }
 0x10d   :  { %3764 = vmatmul.mubr.msk.bf16.vlgmr.msra.gmra.mrb[24].mxu0 %vm115_vm0, %v1094_v31  ;;  %3765 = vmatmul.mubr.msk.bf16.vlgmr.msra.gmra.mrb[24].mxu1 %vm115_vm0, %v1094_v31 }
 0x10e   :  { %1300 = vmatpush1.bf16.msra.mxu1 %v4651_v15  ;;  %1259 = vmatpush1.bf16.msra.mxu0 %v4653_v16 }
 0x10f   :  { %1290 = vmatprep.mubr.bf16.mxu0 %v4482_v0  ;;  %1331 = vmatprep.mubr.bf16.mxu1 %v4482_v0 }
 0x110   :  { %1473 = vmatprep.subr.bf16.mxu1 %v4732_v32  ;;  %1614 = vmatprep.subr.bf16.mxu0 %v4732_v32 }
 0x115   :  { %3771 = vmatmul.mubr.msk.bf16.vlgmr.msra.gmra.mrb[28].mxu0 %vm115_vm0, %v1230_v34  ;;  %3772 = vmatmul.mubr.msk.bf16.vlgmr.msra.gmra.mrb[28].mxu1 %vm115_vm0, %v1230_v34 }
 0x116   :  { %1474 = vmatpush1.bf16.msra.mxu1 %v4745_v35  ;;  %1505 = vmatprep.mubr.bf16.mxu1 %v4482_v0 }
 0x117   :  { %1475 = vmatprep.subr.bf16.mxu1 %v4747_v36  ;;  %1615 = vmatpush1.bf16.msra.mxu0 %v4745_v35 }
 0x118   :  { %1616 = vmatprep.subr.bf16.mxu0 %v4747_v36  ;;  %1646 = vmatprep.mubr.bf16.mxu0 %v4482_v0 }
 0x11a   :  { %1476 = vmatpush1.bf16.msra.mxu1 %v4752_v37 }
 0x11b   :  { %1477 = vmatprep.subr.bf16.mxu1 %v4756_v38  ;;  %1617 = vmatpush1.bf16.msra.mxu0 %v4752_v37 }
 0x11c   :  { %1618 = vmatprep.subr.bf16.mxu0 %v4756_v38 }
 0x11e   :  { %1478 = vmatpush1.bf16.msra.mxu1 %v4762_v39 }
 0x11f   :  { %1479 = vmatprep.subr.bf16.mxu1 %v4765_v40  ;;  %1619 = vmatpush1.bf16.msra.mxu0 %v4762_v39 }
 0x120   :  { %1620 = vmatprep.subr.bf16.mxu0 %v4765_v40 }
 0x122   :  { %1480 = vmatpush1.bf16.msra.mxu1 %v4770_v41 }
 0x123   :  { %1514 = vmatprep.subr.bf16.mxu1 %v4773_v42  ;;  %1621 = vmatpush1.bf16.msra.mxu0 %v4770_v41 }
 0x124   :  { %1755 = vmatprep.subr.bf16.mxu0 %v4732_v32 }
 0x125   :  { %1506 = vmatmul.mubr.bf16.vlgmr.msra.gmra.mrb[32].mxu1 %v4482_v0 }
 0x126   :  { %1515 = vmatpush1.bf16.msra.mxu1 %v4778_v43  ;;  %1546 = vmatprep.mubr.bf16.mxu1 %v4482_v0 }
 0x127   :  { %1516 = vmatprep.subr.bf16.mxu1 %v4781_v44 }
 0x12a   :  { %1517 = vmatpush1.bf16.msra.mxu1 %v4787_v45 }
 0x12b   :  { %1518 = vmatprep.subr.bf16.mxu1 %v4791_v46 }
 0x12e   :  { %1519 = vmatpush1.bf16.msra.mxu1 %v4794_v47 }
 0x12f   :  { %1520 = vmatprep.subr.bf16.mxu1 %v4797_v48 }
 0x132   :  { %1521 = vmatpush1.bf16.msra.mxu1 %v4800_v49 }
 0x133   :  { %1655 = vmatprep.subr.bf16.mxu1 %v4773_v42 }
 0x135   :  { %1547 = vmatmul.mubr.bf16.vlgmr.msra.gmra.mrb[36].mxu1 %v4482_v0 }
 0x136   :  { %1656 = vmatpush1.bf16.msra.mxu1 %v4778_v43  ;;  %1687 = vmatprep.mubr.bf16.mxu1 %v4482_v0 }
 0x137   :  { %1657 = vmatprep.subr.bf16.mxu1 %v4781_v44 }
 0x13a   :  { %1658 = vmatpush1.bf16.msra.mxu1 %v4787_v45 }
 0x13b   :  { %1659 = vmatprep.subr.bf16.mxu1 %v4791_v46 }
 0x13e   :  { %1660 = vmatpush1.bf16.msra.mxu1 %v4794_v47 }
 0x13f   :  { %1661 = vmatprep.subr.bf16.mxu1 %v4797_v48 }
 0x142   :  { %1662 = vmatpush1.bf16.msra.mxu1 %v4800_v49 }
 0x143   :  { %1796 = vmatprep.subr.bf16.mxu1 %v4773_v42 }
 0x1b0   :  { %v337_v2 = vpop.f32.mrb[0].mxu0  ;;  %v378_v3 = vpop.f32.mrb[0].mxu1 }
 0x1b1   :  { %v338_v4 = vadd.f32 %v337_v2, %v4836_v60  ;;  %v379_v5 = vadd.f32 %v378_v3, %v4839_v61  ;;  %v339_v6 = vpop.f32.mrb[1].mxu0  ;;  %v380_v7 = vpop.f32.mrb[1].mxu1 }
 0x1b2   :  { %v340_v8 = vadd.f32 %v339_v6, %v4842_v62  ;;  %v381_v10 = vadd.f32 %v380_v7, %v4845_v1  ;;  %v341_v11 = vpop.f32.mrb[2].mxu0  ;;  %v382_v12 = vpop.f32.mrb[2].mxu1 }
 0x1b3   :  { %v342_v13 = vpop.f32.mrb[3].mxu0  ;;  %v383_v14 = vpop.f32.mrb[3].mxu1 }
 0x1b4   :  { %v393_v15 = vcombine.low %v338_v4, %v340_v8  ;;  %v394_v16 = vcombine.low %v379_v5, %v381_v10 }
 0x1b6   :  { %v4855_v17 = vrot.slane %v393_v15, %v4851_v9  ;;  %v4858_v18 = vrot.slane %v394_v16, %v4851_v9 }
 0x1b8   :  { %v409_v19 = vcombine.low %v4855_v17, %v4858_v18  ;;  %v476_v20 = vpop.f32.mrb[4].mxu0  ;;  %v517_v21 = vpop.f32.mrb[4].mxu1  ;;  %v1380_v17 = vld [vmem:[%s5385_s7] sm:$0x3]  ;;  %s4485_s7 = smov 64  }
 0x1b9   :  { %v477_v22 = vadd.f32 %v476_v20, %v4836_v60  ;;  %v518_v23 = vadd.f32 %v517_v21, %v4839_v61  ;;  %v478_v24 = vpop.f32.mrb[5].mxu0  ;;  %v519_v25 = vpop.f32.mrb[5].mxu1 }
 0x1ba   :  { %v479_v26 = vadd.f32 %v478_v24, %v4842_v62  ;;  %v520_v27 = vadd.f32 %v519_v25, %v4845_v1  ;;  %v521_v28 = vpop.f32.mrb[6].mxu1  ;;  %v480_v29 = vpop.f32.mrb[6].mxu0 }
 0x1bb   :  { %v522_v30 = vpop.f32.mrb[7].mxu1  ;;  %v481_v31 = vpop.f32.mrb[7].mxu0 }
 0x1bc   :  { %v528_v33 = vcombine.low %v477_v22, %v479_v26  ;;  %v529_v34 = vcombine.low %v518_v23, %v520_v27  ;;  %v1385_v18 = vpop.permute.xlu0 %1384 }
 0x1be   :  { %v4867_v50 = vrot.slane %v528_v33, %v4851_v9  ;;  %v4870_v51 = vrot.slane %v529_v34, %v4851_v9 }
 0x1c0   :  { %v544_v55 = vcombine.low %v4867_v50, %v4870_v51  ;;  %v612_v57 = vpop.f32.mrb[8].mxu0  ;;  %v653_v58 = vpop.f32.mrb[8].mxu1 }
 0x1c1   :  { %v613_v63 = vadd.f32 %v612_v57, %v4836_v60  ;;  %v654_v2 = vadd.f32 %v653_v58, %v4839_v61  ;;  %v614_v3 = vpop.f32.mrb[9].mxu0  ;;  %v655_v4 = vpop.f32.mrb[9].mxu1 }
 0x1c2   :  { %v615_v5 = vadd.f32 %v614_v3, %v4842_v62  ;;  %v656_v6 = vadd.f32 %v655_v4, %v4845_v1  ;;  %v657_v7 = vpop.f32.mrb[10].mxu1  ;;  %v616_v8 = vpop.f32.mrb[10].mxu0 }
 0x1c3   :  { %v658_v10 = vpop.f32.mrb[11].mxu1  ;;  %v617_v11 = vpop.f32.mrb[11].mxu0 }
 0x1c4   :  { %v664_v12 = vcombine.low %v613_v63, %v615_v5  ;;  %v665_v13 = vcombine.low %v654_v2, %v656_v6 }
 0x1c6   :  { %v4879_v14 = vrot.slane %v664_v12, %v4851_v9  ;;  %v4882_v15 = vrot.slane %v665_v13, %v4851_v9 }
 0x1c8   :  { %v680_v16 = vcombine.low %v4879_v14, %v4882_v15  ;;  %v748_v20 = vpop.f32.mrb[12].mxu0  ;;  %v789_v21 = vpop.f32.mrb[12].mxu1 }
 0x1c9   :  { %v749_v22 = vadd.f32 %v748_v20, %v4836_v60  ;;  %v790_v23 = vadd.f32 %v789_v21, %v4839_v61  ;;  %v750_v24 = vpop.f32.mrb[13].mxu0  ;;  %v791_v25 = vpop.f32.mrb[13].mxu1 }
 0x1ca   :  { %v751_v26 = vadd.f32 %v750_v24, %v4842_v62  ;;  %v792_v27 = vadd.f32 %v791_v25, %v4845_v1  ;;  %v793_v28 = vpop.f32.mrb[14].mxu1  ;;  %v752_v29 = vpop.f32.mrb[14].mxu0 }
 0x1cb   :  { %v794_v30 = vpop.f32.mrb[15].mxu1  ;;  %v753_v31 = vpop.f32.mrb[15].mxu0 }
 0x1cc   :  { %v800_v33 = vcombine.low %v749_v22, %v751_v26  ;;  %v801_v34 = vcombine.low %v790_v23, %v792_v27 }
 0x1ce   :  { %v4891_v57 = vrot.slane %v800_v33, %v4851_v9  ;;  %v4894_v58 = vrot.slane %v801_v34, %v4851_v9 }
 0x1d0   :  { %v816_v63 = vcombine.low %v4891_v57, %v4894_v58  ;;  %v884_v2 = vpop.f32.mrb[16].mxu0  ;;  %v925_v3 = vpop.f32.mrb[16].mxu1 }
 0x1d1   :  { %v885_v4 = vadd.f32 %v884_v2, %v4836_v60  ;;  %v926_v5 = vadd.f32 %v925_v3, %v4839_v61  ;;  %v886_v6 = vpop.f32.mrb[17].mxu0  ;;  %v927_v7 = vpop.f32.mrb[17].mxu1 }
 0x1d2   :  { %v887_v8 = vadd.f32 %v886_v6, %v4842_v62  ;;  %v928_v10 = vadd.f32 %v927_v7, %v4845_v1  ;;  %v929_v11 = vpop.f32.mrb[18].mxu1  ;;  %v888_v12 = vpop.f32.mrb[18].mxu0 }
 0x1d3   :  { %v930_v13 = vpop.f32.mrb[19].mxu1  ;;  %v889_v20 = vpop.f32.mrb[19].mxu0 }
 0x1d4   :  { %v936_v21 = vcombine.low %v885_v4, %v887_v8  ;;  %v937_v22 = vcombine.low %v926_v5, %v928_v10 }
 0x1d6   :  { %v4903_v23 = vrot.slane %v936_v21, %v4851_v9  ;;  %v4906_v24 = vrot.slane %v937_v22, %v4851_v9 }
 0x1d8   :  { %v952_v25 = vcombine.low %v4903_v23, %v4906_v24  ;;  %v1020_v26 = vpop.f32.mrb[20].mxu0  ;;  %v1061_v27 = vpop.f32.mrb[20].mxu1 }
 0x1d9   :  { %v1021_v28 = vadd.f32 %v1020_v26, %v4836_v60  ;;  %v1062_v29 = vadd.f32 %v1061_v27, %v4839_v61  ;;  %v1022_v30 = vpop.f32.mrb[21].mxu0  ;;  %v1063_v31 = vpop.f32.mrb[21].mxu1 }
 0x1da   :  { %v1023_v33 = vadd.f32 %v1022_v30, %v4842_v62  ;;  %v1064_v34 = vadd.f32 %v1063_v31, %v4845_v1  ;;  %v1065_v2 = vpop.f32.mrb[22].mxu1  ;;  %v1024_v3 = vpop.f32.mrb[22].mxu0 }
 0x1db   :  { %v1066_v4 = vpop.f32.mrb[23].mxu1  ;;  %v1025_v5 = vpop.f32.mrb[23].mxu0 }
 0x1dc   :  { %v1072_v6 = vcombine.low %v1021_v28, %v1023_v33  ;;  %v1073_v7 = vcombine.low %v1062_v29, %v1064_v34 }
 0x1de   :  { %v4915_v8 = vrot.slane %v1072_v6, %v4851_v9  ;;  %v4918_v10 = vrot.slane %v1073_v7, %v4851_v9 }
 0x1e0   :  { %v1088_v11 = vcombine.low %v4915_v8, %v4918_v10  ;;  %v1156_v12 = vpop.f32.mrb[24].mxu0  ;;  %v1197_v13 = vpop.f32.mrb[24].mxu1 }
 0x1e1   :  { %v1157_v20 = vadd.f32 %v1156_v12, %v4836_v60  ;;  %v1198_v21 = vadd.f32 %v1197_v13, %v4839_v61  ;;  %v1158_v22 = vpop.f32.mrb[25].mxu0  ;;  %v1199_v26 = vpop.f32.mrb[25].mxu1 }
 0x1e2   :  { %v1159_v27 = vadd.f32 %v1158_v22, %v4842_v62  ;;  %v1200_v28 = vadd.f32 %v1199_v26, %v4845_v1  ;;  %v1201_v29 = vpop.f32.mrb[26].mxu1  ;;  %v1160_v30 = vpop.f32.mrb[26].mxu0 }
 0x1e3   :  { %v1202_v31 = vpop.f32.mrb[27].mxu1  ;;  %v1161_v33 = vpop.f32.mrb[27].mxu0 }
 0x1e4   :  { %v1208_v34 = vcombine.low %v1157_v20, %v1159_v27  ;;  %v1209_v2 = vcombine.low %v1198_v21, %v1200_v28 }
 0x1e6   :  { %v4927_v3 = vrot.slane %v1208_v34, %v4851_v9  ;;  %v4930_v4 = vrot.slane %v1209_v2, %v4851_v9 }
 0x1e8   :  { %v1224_v5 = vcombine.low %v4927_v3, %v4930_v4  ;;  %v1292_v6 = vpop.f32.mrb[28].mxu0  ;;  %v1333_v7 = vpop.f32.mrb[28].mxu1 }
 0x1e9   :  { %v1293_v12 = vadd.f32 %v1292_v6, %v4836_v60  ;;  %v1334_v13 = vadd.f32 %v1333_v7, %v4839_v61  ;;  %v1294_v22 = vpop.f32.mrb[29].mxu0  ;;  %v1335_v26 = vpop.f32.mrb[29].mxu1 }
 0x1ea   :  { %v1295_v20 = vadd.f32 %v1294_v22, %v4842_v62  ;;  %v1336_v21 = vadd.f32 %v1335_v26, %v4845_v1  ;;  %v1337_v27 = vpop.f32.mrb[30].mxu1  ;;  %v1296_v28 = vpop.f32.mrb[30].mxu0 }
 0x1eb   :  { %v1338_v29 = vpop.f32.mrb[31].mxu1  ;;  %v1297_v30 = vpop.f32.mrb[31].mxu0 }
 0x1ec   :  { %v1344_v31 = vcombine.low %v1293_v12, %v1295_v20  ;;  %v1345_v33 = vcombine.low %v1334_v13, %v1336_v21 }
 0x1ee   :  { %v4939_v34 = vrot.slane %v1344_v31, %v4851_v9  ;;  %v4942_v2 = vrot.slane %v1345_v33, %v4851_v9 }
 0x1f0   :  { %v1360_v60 = vcombine.low %v4939_v34, %v4942_v2 }
 0x1f8   :  { %v1507_v61 = vpop.f32.mrb[32].mxu1 }
 0x1f9   :  { %v1509_v6 = vpop.f32.mrb[33].mxu1 }
 0x1fa   :  { %v1559_v62 = vcombine.low %v1507_v61, %v1509_v6  ;;  %v1511_v7 = vpop.f32.mrb[34].mxu1 }
 0x1fb   :  { %v1512_v1 = vpop.f32.mrb[35].mxu1 }
 0x1fc   :  { %v1567_v13 = vrot.slane %v1559_v62, %v4851_v9 }
 0x208   :  { %v1548_v22 = vpop.f32.mrb[36].mxu1 }
 0x209   :  { %v1550_v26 = vpop.f32.mrb[37].mxu1 }
 0x20a   :  { %v1560_v27 = vcombine.low %v1548_v22, %v1550_v26  ;;  %v1552_v28 = vpop.f32.mrb[38].mxu1 }
 0x20b   :  { %v1553_v12 = vpop.f32.mrb[39].mxu1  ;;  %v1387_v28 = vsel %vm166_vm1, %v1380_v17, %v1385_v18 }
 0x20c   :  { %v1574_v20 = vrot.slane %v1560_v27, %v4851_v9 }
 0x20e   :  { %v1575_v21 = vcombine.low %v1567_v13, %v1574_v20 }
 0x210   :  { %v1577_v29 = vadd.f32 %v1575_v21, %v409_v19 }
 0x212   :  { %v3790_v30 = vmul.f32 -1.442695, %v1577_v29  ;;  %v1585_v31 = vrot.slane %v1577_v29, 2  ;;  %v1596_v61 = vrot.slane %v1577_v29, 6  ;;  %v1593_v1 = vrot.slane %v1577_v29, 4 }
 0x214   :  { %4205 = vpow2.f32 %v3790_v30  ;;  %v3791_v33 = vmul.f32 -1.442695, %v1585_v31  ;;  %v3792_v6 = vmul.f32 -1.442695, %v1596_v61 }
 0x216   :  { %4207 = vpow2.f32 %v3791_v33 }
 0x217   :  { %4209 = vpow2.f32 %v3792_v6 }
 0x21e   :  { %v4206_v7 = vpop.eup %4205 }
 0x21f   :  { %v1581_v22 = vadd.f32 1.0, %v4206_v7 }
 0x220   :  { %v4208_v26 = vpop.eup %4207 }
 0x221   :  { %4211 = vrcp.f32 %v1581_v22  ;;  %v1590_v62 = vadd.f32 1.0, %v4208_v26  ;;  %v4210_v19 = vpop.eup %4209 }
 0x222   :  { %4213 = vtanh.f32 %v1593_v1  ;;  %v1601_v20 = vadd.f32 1.0, %v4210_v19 }
 0x223   :  { %4215 = vrcp.f32 %v1590_v62 }
 0x224   :  { %4217 = vrcp.f32 %v1601_v20 }
 0x22b   :  { %v4212_v27 = vpop.eup %4211 }
 0x22c   :  { %v4214_v12 = vpop.eup %4213 }
 0x22d   :  { %v4216_v13 = vpop.eup %4215  ;;  %v1605_v29 = vmul.f32 %v4214_v12, %v4212_v27 }
 0x22e   :  { %v1604_v21 = vmul.f32 %v4216_v13, %v1387_v28  ;;  %v4218_v31 = vpop.eup %4217 }
 0x230   :  { %v4955_v30 = vadd.f32 %v1605_v29, %v1604_v21 }
 0x232   :  { %4219 = vtanh.f32 %v4955_v30 }
 0x23c   :  { %v4220_v33 = vpop.eup %4219 }
 0x23d   :  { %v4958_v61 = vmul.f32 %v4220_v33, %v4218_v31 }
 0x23f   :  { %v1610_v6 = vpack.c.bf16 %v4958_v61, %v4958_v61 }
 0x241   :  { %3793 = vmatmul.mubr.msk.bf16.vlgmr.msra.gmra.mrb[32].mxu0 %vm1469_vm2, %v1610_v6  ;;  %3794 = vmatmul.mubr.msk.bf16.vlgmr.msra.gmra.mrb[40].mxu1 %vm1469_vm2, %v1610_v6 }
 0x242   :  { %1756 = vmatpush1.bf16.msra.mxu0 %v4745_v35  ;;  %1797 = vmatpush1.bf16.msra.mxu1 %v4778_v43 }
 0x243   :  { %1757 = vmatprep.subr.bf16.mxu0 %v4747_v36  ;;  %1798 = vmatprep.subr.bf16.mxu1 %v4781_v44 }
 0x244   :  { %1787 = vmatprep.mubr.bf16.mxu0 %v4482_v0  ;;  %1828 = vmatprep.mubr.bf16.mxu1 %v4482_v0 }
 0x246   :  { %1758 = vmatpush1.bf16.msra.mxu0 %v4752_v37  ;;  %1799 = vmatpush1.bf16.msra.mxu1 %v4787_v45 }
 0x247   :  { %1759 = vmatprep.subr.bf16.mxu0 %v4756_v38  ;;  %1800 = vmatprep.subr.bf16.mxu1 %v4791_v46 }
 0x24a   :  { %1760 = vmatpush1.bf16.msra.mxu0 %v4762_v39  ;;  %1801 = vmatpush1.bf16.msra.mxu1 %v4794_v47 }
 0x24b   :  { %1761 = vmatprep.subr.bf16.mxu0 %v4765_v40  ;;  %1802 = vmatprep.subr.bf16.mxu1 %v4797_v48 }
 0x24e   :  { %1762 = vmatpush1.bf16.msra.mxu0 %v4770_v41  ;;  %1803 = vmatpush1.bf16.msra.mxu1 %v4800_v49 }
 0x24f   :  { %1896 = vmatprep.subr.bf16.mxu0 %v4732_v32  ;;  %1937 = vmatprep.subr.bf16.mxu1 %v4773_v42 }
 0x314   :  { %v1648_v7 = vpop.f32.mrb[32].mxu0  ;;  %v1689_v1 = vpop.f32.mrb[40].mxu1 }
 0x315   :  { %v1650_v22 = vpop.f32.mrb[33].mxu0  ;;  %v1691_v26 = vpop.f32.mrb[41].mxu1 }
 0x316   :  { %v1700_v62 = vcombine.low %v1648_v7, %v1650_v22  ;;  %v1701_v17 = vcombine.low %v1689_v1, %v1691_v26  ;;  %v1652_v18 = vpop.f32.mrb[34].mxu0  ;;  %v1693_v19 = vpop.f32.mrb[42].mxu1 }
 0x317   :  { %v1653_v27 = vpop.f32.mrb[35].mxu0  ;;  %v1694_v28 = vpop.f32.mrb[43].mxu1 }
 0x318   :  { %v1708_v12 = vrot.slane %v1700_v62, %v4851_v9  ;;  %v1715_v13 = vrot.slane %v1701_v17, %v4851_v9 }
 0x31a   :  { %v1716_v20 = vcombine.low %v1708_v12, %v1715_v13 }
 0x31c   :  { %v1718_v21 = vadd.f32 %v1716_v20, %v544_v55 }
 0x31e   :  { %v3795_v29 = vmul.f32 -1.442695, %v1718_v21  ;;  %v1726_v31 = vrot.slane %v1718_v21, 2  ;;  %v1737_v6 = vrot.slane %v1718_v21, 6  ;;  %v1734_v22 = vrot.slane %v1718_v21, 4 }
 0x320   :  { %4221 = vpow2.f32 %v3795_v29  ;;  %v3796_v33 = vmul.f32 -1.442695, %v1726_v31  ;;  %v3797_v7 = vmul.f32 -1.442695, %v1737_v6 }
 0x322   :  { %4223 = vpow2.f32 %v3796_v33 }
 0x323   :  { %4225 = vpow2.f32 %v3797_v7 }
 0x32a   :  { %v4222_v1 = vpop.eup %4221 }
 0x32b   :  { %v1722_v26 = vadd.f32 1.0, %v4222_v1 }
 0x32c   :  { %v4224_v18 = vpop.eup %4223 }
 0x32d   :  { %4227 = vrcp.f32 %v1722_v26  ;;  %v1731_v62 = vadd.f32 1.0, %v4224_v18  ;;  %v4226_v17 = vpop.eup %4225 }
 0x32e   :  { %4229 = vtanh.f32 %v1734_v22  ;;  %v1742_v55 = vadd.f32 1.0, %v4226_v17 }
 0x32f   :  { %4231 = vrcp.f32 %v1731_v62 }
 0x330   :  { %4233 = vrcp.f32 %v1742_v55 }
 0x337   :  { %v4228_v19 = vpop.eup %4227 }
 0x338   :  { %v4230_v50 = vpop.eup %4229 }
 0x339   :  { %v4232_v51 = vpop.eup %4231  ;;  %v1746_v27 = vmul.f32 %v4230_v50, %v4228_v19 }
 0x33a   :  { %v1745_v28 = vmul.f32 %v4232_v51, %v4955_v30  ;;  %v4234_v13 = vpop.eup %4233 }
 0x33c   :  { %v4988_v12 = vadd.f32 %v1746_v27, %v1745_v28 }
 0x33e   :  { %4235 = vtanh.f32 %v4988_v12 }
 0x348   :  { %v4236_v20 = vpop.eup %4235 }
 0x349   :  { %v4991_v21 = vmul.f32 %v4236_v20, %v4234_v13 }
 0x34b   :  { %v1751_v29 = vpack.c.bf16 %v4991_v21, %v4991_v21 }
 0x34d   :  { %3798 = vmatmul.mubr.msk.bf16.vlgmr.msra.gmra.mrb[36].mxu0 %vm1469_vm2, %v1751_v29  ;;  %3799 = vmatmul.mubr.msk.bf16.vlgmr.msra.gmra.mrb[44].mxu1 %vm1469_vm2, %v1751_v29 }
 0x34e   :  { %1897 = vmatpush1.bf16.msra.mxu0 %v4745_v35  ;;  %1938 = vmatpush1.bf16.msra.mxu1 %v4778_v43 }
 0x34f   :  { %1898 = vmatprep.subr.bf16.mxu0 %v4747_v36  ;;  %1939 = vmatprep.subr.bf16.mxu1 %v4781_v44 }
 0x350   :  { %1928 = vmatprep.mubr.bf16.mxu0 %v4482_v0  ;;  %1969 = vmatprep.mubr.bf16.mxu1 %v4482_v0 }
 0x352   :  { %1899 = vmatpush1.bf16.msra.mxu0 %v4752_v37  ;;  %1940 = vmatpush1.bf16.msra.mxu1 %v4787_v45 }
 0x353   :  { %1900 = vmatprep.subr.bf16.mxu0 %v4756_v38  ;;  %1941 = vmatprep.subr.bf16.mxu1 %v4791_v46 }
 0x356   :  { %1901 = vmatpush1.bf16.msra.mxu0 %v4762_v39  ;;  %1942 = vmatpush1.bf16.msra.mxu1 %v4794_v47 }
 0x357   :  { %1902 = vmatprep.subr.bf16.mxu0 %v4765_v40  ;;  %1943 = vmatprep.subr.bf16.mxu1 %v4797_v48 }
 0x35a   :  { %1903 = vmatpush1.bf16.msra.mxu0 %v4770_v41  ;;  %1944 = vmatpush1.bf16.msra.mxu1 %v4800_v49 }
 0x35b   :  { %2037 = vmatprep.subr.bf16.mxu0 %v4732_v32  ;;  %2078 = vmatprep.subr.bf16.mxu1 %v4773_v42 }
 0x420   :  { %v1789_v30 = vpop.f32.mrb[36].mxu0  ;;  %v1830_v31 = vpop.f32.mrb[44].mxu1 }
 0x421   :  { %v1791_v33 = vpop.f32.mrb[37].mxu0  ;;  %v1832_v6 = vpop.f32.mrb[45].mxu1 }
 0x422   :  { %v1841_v7 = vcombine.low %v1789_v30, %v1791_v33  ;;  %v1842_v1 = vcombine.low %v1830_v31, %v1832_v6  ;;  %v1793_v22 = vpop.f32.mrb[38].mxu0  ;;  %v1834_v26 = vpop.f32.mrb[46].mxu1 }
 0x423   :  { %v1794_v18 = vpop.f32.mrb[39].mxu0  ;;  %v1835_v62 = vpop.f32.mrb[47].mxu1 }
 0x424   :  { %v1849_v17 = vrot.slane %v1841_v7, %v4851_v9  ;;  %v1856_v19 = vrot.slane %v1842_v1, %v4851_v9 }
 0x426   :  { %v1857_v50 = vcombine.low %v1849_v17, %v1856_v19 }
 0x428   :  { %v1859_v51 = vadd.f32 %v1857_v50, %v680_v16 }
 0x42a   :  { %v3800_v55 = vmul.f32 -1.442695, %v1859_v51  ;;  %v1867_v27 = vrot.slane %v1859_v51, 2  ;;  %v1878_v13 = vrot.slane %v1859_v51, 6  ;;  %v1875_v30 = vrot.slane %v1859_v51, 4 }
 0x42c   :  { %4237 = vpow2.f32 %v3800_v55  ;;  %v3801_v28 = vmul.f32 -1.442695, %v1867_v27  ;;  %v3802_v20 = vmul.f32 -1.442695, %v1878_v13 }
 0x42e   :  { %4239 = vpow2.f32 %v3801_v28 }
 0x42f   :  { %4241 = vpow2.f32 %v3802_v20 }
 0x436   :  { %v4238_v29 = vpop.eup %4237 }
 0x437   :  { %v1863_v31 = vadd.f32 1.0, %v4238_v29 }
 0x438   :  { %v4240_v33 = vpop.eup %4239 }
 0x439   :  { %4243 = vrcp.f32 %v1863_v31  ;;  %v1872_v6 = vadd.f32 1.0, %v4240_v33  ;;  %v4242_v7 = vpop.eup %4241 }
 0x43a   :  { %4245 = vtanh.f32 %v1875_v30  ;;  %v1883_v16 = vadd.f32 1.0, %v4242_v7 }
 0x43b   :  { %4247 = vrcp.f32 %v1872_v6 }
 0x43c   :  { %4249 = vrcp.f32 %v1883_v16 }
 0x443   :  { %v4244_v1 = vpop.eup %4243 }
 0x444   :  { %v4246_v14 = vpop.eup %4245 }
 0x445   :  { %v4248_v15 = vpop.eup %4247  ;;  %v1887_v22 = vmul.f32 %v4246_v14, %v4244_v1 }
 0x446   :  { %v1886_v26 = vmul.f32 %v4248_v15, %v4988_v12  ;;  %v4250_v62 = vpop.eup %4249 }
 0x448   :  { %v5021_v18 = vadd.f32 %v1887_v22, %v1886_v26 }
 0x44a   :  { %4251 = vtanh.f32 %v5021_v18 }
 0x454   :  { %v4252_v17 = vpop.eup %4251 }
 0x455   :  { %v5024_v19 = vmul.f32 %v4252_v17, %v4250_v62 }
 0x457   :  { %v1892_v50 = vpack.c.bf16 %v5024_v19, %v5024_v19 }
 0x459   :  { %3803 = vmatmul.mubr.msk.bf16.vlgmr.msra.gmra.mrb[40].mxu0 %vm1469_vm2, %v1892_v50  ;;  %3804 = vmatmul.mubr.msk.bf16.vlgmr.msra.gmra.mrb[48].mxu1 %vm1469_vm2, %v1892_v50 }
 0x45a   :  { %2038 = vmatpush1.bf16.msra.mxu0 %v4745_v35  ;;  %2079 = vmatpush1.bf16.msra.mxu1 %v4778_v43 }
 0x45b   :  { %2039 = vmatprep.subr.bf16.mxu0 %v4747_v36  ;;  %2080 = vmatprep.subr.bf16.mxu1 %v4781_v44 }
 0x45c   :  { %2069 = vmatprep.mubr.bf16.mxu0 %v4482_v0  ;;  %2110 = vmatprep.mubr.bf16.mxu1 %v4482_v0 }
 0x45e   :  { %2040 = vmatpush1.bf16.msra.mxu0 %v4752_v37  ;;  %2081 = vmatpush1.bf16.msra.mxu1 %v4787_v45 }
 0x45f   :  { %2041 = vmatprep.subr.bf16.mxu0 %v4756_v38  ;;  %2082 = vmatprep.subr.bf16.mxu1 %v4791_v46 }
 0x462   :  { %2042 = vmatpush1.bf16.msra.mxu0 %v4762_v39  ;;  %2083 = vmatpush1.bf16.msra.mxu1 %v4794_v47 }
 0x463   :  { %2043 = vmatprep.subr.bf16.mxu0 %v4765_v40  ;;  %2084 = vmatprep.subr.bf16.mxu1 %v4797_v48 }
 0x466   :  { %2044 = vmatpush1.bf16.msra.mxu0 %v4770_v41  ;;  %2085 = vmatpush1.bf16.msra.mxu1 %v4800_v49 }
 0x467   :  { %2178 = vmatprep.subr.bf16.mxu0 %v4732_v32  ;;  %2219 = vmatprep.subr.bf16.mxu1 %v4773_v42 }
 0x52c   :  { %v1930_v12 = vpop.f32.mrb[40].mxu0  ;;  %v1971_v51 = vpop.f32.mrb[48].mxu1 }
 0x52d   :  { %v1932_v55 = vpop.f32.mrb[41].mxu0  ;;  %v1973_v27 = vpop.f32.mrb[49].mxu1 }
 0x52e   :  { %v1982_v28 = vcombine.low %v1930_v12, %v1932_v55  ;;  %v1983_v13 = vcombine.low %v1971_v51, %v1973_v27  ;;  %v1934_v20 = vpop.f32.mrb[42].mxu0  ;;  %v1975_v29 = vpop.f32.mrb[50].mxu1 }
 0x52f   :  { %v1935_v30 = vpop.f32.mrb[43].mxu0  ;;  %v1976_v31 = vpop.f32.mrb[51].mxu1 }
 0x530   :  { %v1990_v33 = vrot.slane %v1982_v28, %v4851_v9  ;;  %v1997_v6 = vrot.slane %v1983_v13, %v4851_v9 }
 0x532   :  { %v1998_v7 = vcombine.low %v1990_v33, %v1997_v6  ;;  %v2603_v6 = vrot.slane %v4991_v21, %v4851_v9 }
 0x534   :  { %v2000_v1 = vadd.f32 %v1998_v7, %v816_v63 }
 0x536   :  { %v3805_v14 = vmul.f32 -1.442695, %v2000_v1  ;;  %v2008_v15 = vrot.slane %v2000_v1, 2  ;;  %v2019_v22 = vrot.slane %v2000_v1, 6  ;;  %v2016_v17 = vrot.slane %v2000_v1, 4 }
 0x538   :  { %4253 = vpow2.f32 %v3805_v14  ;;  %v3806_v16 = vmul.f32 -1.442695, %v2008_v15  ;;  %v3807_v26 = vmul.f32 -1.442695, %v2019_v22 }
 0x53a   :  { %4255 = vpow2.f32 %v3806_v16 }
 0x53b   :  { %4257 = vpow2.f32 %v3807_v26 }
 0x542   :  { %v4254_v62 = vpop.eup %4253 }
 0x543   :  { %v2004_v50 = vadd.f32 1.0, %v4254_v62 }
 0x544   :  { %v4256_v12 = vpop.eup %4255 }
 0x545   :  { %4259 = vrcp.f32 %v2004_v50  ;;  %v2013_v51 = vadd.f32 1.0, %v4256_v12  ;;  %v4258_v55 = vpop.eup %4257 }
 0x546   :  { %4261 = vtanh.f32 %v2016_v17  ;;  %v2024_v63 = vadd.f32 1.0, %v4258_v55 }
 0x547   :  { %4263 = vrcp.f32 %v2013_v51 }
 0x548   :  { %4265 = vrcp.f32 %v2024_v63 }
 0x54f   :  { %v4260_v27 = vpop.eup %4259 }
 0x550   :  { %v4262_v57 = vpop.eup %4261 }
 0x551   :  { %v4264_v58 = vpop.eup %4263  ;;  %v2028_v28 = vmul.f32 %v4262_v57, %v4260_v27 }
 0x552   :  { %v2027_v13 = vmul.f32 %v4264_v58, %v5021_v18  ;;  %v4266_v29 = vpop.eup %4265 }
 0x554   :  { %v5054_v20 = vadd.f32 %v2028_v28, %v2027_v13 }
 0x556   :  { %4267 = vtanh.f32 %v5054_v20 }
 0x560   :  { %v4268_v30 = vpop.eup %4267 }
 0x561   :  { %v2031_v31 = vmul.f32 %v4268_v30, %v4266_v29 }
 0x563   :  { %v2033_v33 = vpack.c.bf16 %v2031_v31, %v2031_v31  ;;  %v2614_v7 = vrot.slane %v2031_v31, %v4851_v9 }
 0x565   :  { %3808 = vmatmul.mubr.msk.bf16.vlgmr.msra.gmra.mrb[44].mxu0 %vm1469_vm2, %v2033_v33  ;;  %3809 = vmatmul.mubr.msk.bf16.vlgmr.msra.gmra.mrb[52].mxu1 %vm1469_vm2, %v2033_v33  ;;  %v3993_v1 = vpack.i.bf16 %v2603_v6, %v2614_v7  ;;  %v5096_v7 = vld [vmem:[#allocation7] ss:$16 sps:$4 sm:$0xff]  }
 0x566   :  { %2179 = vmatpush1.bf16.msra.mxu0 %v4745_v35  ;;  %2220 = vmatpush1.bf16.msra.mxu1 %v4778_v43 }
 0x567   :  { %3994 = vrot.lane.b32.xlu1 %v3993_v1, %s4485_s7  ;;  %2180 = vmatprep.subr.bf16.mxu0 %v4747_v36  ;;  %v5106_v1 = vld [vmem:[#allocation7 + $0x20] ss:$16 sps:$4 sm:$0xff]  }
 0x568   :  { %2221 = vmatprep.subr.bf16.mxu1 %v4781_v44  ;;  %2210 = vmatprep.mubr.bf16.mxu0 %v4482_v0 }
 0x569   :  { %2251 = vmatprep.mubr.bf16.mxu1 %v4482_v0 }
 0x56a   :  { %2181 = vmatpush1.bf16.msra.mxu0 %v4752_v37  ;;  %2222 = vmatpush1.bf16.msra.mxu1 %v4787_v45 }
 0x56b   :  { %2182 = vmatprep.subr.bf16.mxu0 %v4756_v38  ;;  %2223 = vmatprep.subr.bf16.mxu1 %v4791_v46 }
 0x56e   :  { %2183 = vmatpush1.bf16.msra.mxu0 %v4762_v39  ;;  %2224 = vmatpush1.bf16.msra.mxu1 %v4794_v47 }
 0x56f   :  { %2184 = vmatprep.subr.bf16.mxu0 %v4765_v40  ;;  %2225 = vmatprep.subr.bf16.mxu1 %v4797_v48 }
 0x572   :  { %2185 = vmatpush1.bf16.msra.mxu0 %v4770_v41  ;;  %2226 = vmatpush1.bf16.msra.mxu1 %v4800_v49 }
 0x573   :  { %2319 = vmatprep.subr.bf16.mxu0 %v4732_v32  ;;  %2360 = vmatprep.subr.bf16.mxu1 %v4773_v42 }
 0x638   :  { %v2071_v35 = vpop.f32.mrb[44].mxu0  ;;  %v2112_v36 = vpop.f32.mrb[52].mxu1 }
 0x639   :  { %v2073_v37 = vpop.f32.mrb[45].mxu0  ;;  %v2114_v38 = vpop.f32.mrb[53].mxu1 }
 0x63a   :  { %v2123_v21 = vcombine.low %v2071_v35, %v2073_v37  ;;  %v2124_v39 = vcombine.low %v2112_v36, %v2114_v38  ;;  %v2075_v18 = vpop.f32.mrb[46].mxu0  ;;  %v2116_v14 = vpop.f32.mrb[54].mxu1  ;;  %v5110_v35 = vld [vmem:[#allocation7 + $0x44] ss:$16 sps:$4 sm:$0xff]   ;;  %v5122_v36 = vld [vmem:[#allocation7 + $0x60] ss:$16 sps:$4 sm:$0xff]  }
 0x63b   :  { %v2076_v15 = vpop.f32.mrb[47].mxu0  ;;  %v2117_v40 = vpop.f32.mrb[55].mxu1 }
 0x63c   :  { %v2131_v16 = vrot.slane %v2123_v21, %v4851_v9  ;;  %v2138_v41 = vrot.slane %v2124_v39, %v4851_v9 }
 0x63e   :  { %v2139_v22 = vcombine.low %v2131_v16, %v2138_v41 }
 0x640   :  { %v2141_v32 = vadd.f32 %v2139_v22, %v952_v25 }
 0x642   :  { %v3810_v42 = vmul.f32 -1.442695, %v2141_v32  ;;  %v2149_v26 = vrot.slane %v2141_v32, 2  ;;  %v2160_v17 = vrot.slane %v2141_v32, 6  ;;  %v2157_v51 = vrot.slane %v2141_v32, 4 }
 0x644   :  { %4269 = vpow2.f32 %v3810_v42  ;;  %v3811_v62 = vmul.f32 -1.442695, %v2149_v26  ;;  %v3812_v50 = vmul.f32 -1.442695, %v2160_v17 }
 0x646   :  { %4271 = vpow2.f32 %v3811_v62 }
 0x647   :  { %4273 = vpow2.f32 %v3812_v50 }
 0x64e   :  { %v4270_v12 = vpop.eup %4269 }
 0x64f   :  { %v2145_v55 = vadd.f32 1.0, %v4270_v12 }
 0x650   :  { %v4272_v27 = vpop.eup %4271 }
 0x651   :  { %4275 = vrcp.f32 %v2145_v55  ;;  %v2154_v57 = vadd.f32 1.0, %v4272_v27  ;;  %v4274_v58 = vpop.eup %4273 }
 0x652   :  { %4277 = vtanh.f32 %v2157_v51  ;;  %v2165_v25 = vadd.f32 1.0, %v4274_v58 }
 0x653   :  { %4279 = vrcp.f32 %v2154_v57 }
 0x654   :  { %4281 = vrcp.f32 %v2165_v25 }
 0x65b   :  { %v4276_v63 = vpop.eup %4275 }
 0x65c   :  { %v4278_v23 = vpop.eup %4277 }
 0x65d   :  { %v4280_v24 = vpop.eup %4279  ;;  %v2169_v28 = vmul.f32 %v4278_v23, %v4276_v63 }
 0x65e   :  { %v2168_v13 = vmul.f32 %v4280_v24, %v5054_v20  ;;  %v4282_v30 = vpop.eup %4281  ;;  %v5100_v20 = vld [vmem:[#allocation7 + $0x24] ss:$16 sps:$4 sm:$0xff]  }
 0x660   :  { %v5087_v29 = vadd.f32 %v2169_v28, %v2168_v13 }
 0x662   :  { %4283 = vtanh.f32 %v5087_v29 }
 0x66c   :  { %v4284_v31 = vpop.eup %4283 }
 0x66d   :  { %v5090_v33 = vmul.f32 %v4284_v31, %v4282_v30  ;;  %v4350_v31 = vld [vmem:[#allocation7 + $0x8] ss:$16 sps:$4 sm:$0xff]  }
 0x66f   :  { %v2174_v6 = vpack.c.bf16 %v5090_v33, %v5090_v33 }
 0x671   :  { %3813 = vmatmul.mubr.msk.bf16.vlgmr.msra.gmra.mrb[48].mxu0 %vm1469_vm2, %v2174_v6  ;;  %3814 = vmatmul.mubr.msk.bf16.vlgmr.msra.gmra.mrb[56].mxu1 %vm1469_vm2, %v2174_v6  ;;  %v4352_v6 = vld [vmem:[#allocation7 + $0x28] ss:$16 sps:$4 sm:$0xff]  }
 0x672   :  { %2320 = vmatpush1.bf16.msra.mxu0 %v5096_v7  ;;  %2361 = vmatpush1.bf16.msra.mxu1 %v4778_v43  ;;  %v5114_v43 = vld [vmem:[#allocation7 + $0x40] ss:$16 sps:$4 sm:$0xff]  }
 0x673   :  { %2321 = vmatprep.subr.bf16.mxu0 %v5100_v20  ;;  %2362 = vmatprep.subr.bf16.mxu1 %v4781_v44  ;;  %v5118_v44 = vld [vmem:[#allocation7 + $0x64] ss:$16 sps:$4 sm:$0xff]  }
 0x674   :  { %2351 = vmatprep.mubr.bf16.mxu0 %v4482_v0  ;;  %2392 = vmatprep.mubr.bf16.mxu1 %v4482_v0 }
 0x676   :  { %2322 = vmatpush1.bf16.msra.mxu0 %v5106_v1  ;;  %2363 = vmatpush1.bf16.msra.mxu1 %v4787_v45  ;;  %v4348_v45 = vld [vmem:[#allocation7 + $0x4] ss:$16 sps:$4 sm:$0xff]  }
 0x677   :  { %2323 = vmatprep.subr.bf16.mxu0 %v5110_v35  ;;  %2364 = vmatprep.subr.bf16.mxu1 %v4791_v46  ;;  %v4349_v46 = vld [vmem:[#allocation7 + $0xc] ss:$16 sps:$4 sm:$0xff]  }
 0x67a   :  { %2324 = vmatpush1.bf16.msra.mxu0 %v5114_v43  ;;  %2365 = vmatpush1.bf16.msra.mxu1 %v4794_v47 }
 0x67b   :  { %2325 = vmatprep.subr.bf16.mxu0 %v5118_v44  ;;  %2366 = vmatprep.subr.bf16.mxu1 %v4797_v48 }
 0x67e   :  { %2326 = vmatpush1.bf16.msra.mxu0 %v5122_v36  ;;  %2367 = vmatpush1.bf16.msra.mxu1 %v4800_v49 }
 0x67f   :  { %2460 = vmatprep.subr.bf16.mxu0 %v4348_v45  ;;  %2501 = vmatprep.subr.bf16.mxu1 %v4349_v46  ;;  %v4353_v45 = vld [vmem:[#allocation7 + $0x4c] ss:$16 sps:$4 sm:$0xff]   ;;  %v4356_v46 = vld [vmem:[#allocation7 + $0x68] ss:$16 sps:$4 sm:$0xff]  }
 0x744   :  { %v2212_v37 = vpop.f32.mrb[48].mxu0  ;;  %v2253_v38 = vpop.f32.mrb[56].mxu1 }
 0x745   :  { %v2214_v21 = vpop.f32.mrb[49].mxu0  ;;  %v2255_v47 = vpop.f32.mrb[57].mxu1 }
 0x746   :  { %v2264_v39 = vcombine.low %v2212_v37, %v2214_v21  ;;  %v2265_v18 = vcombine.low %v2253_v38, %v2255_v47  ;;  %v2216_v14 = vpop.f32.mrb[50].mxu0  ;;  %v2257_v15 = vpop.f32.mrb[58].mxu1 }
 0x747   :  { %v2217_v40 = vpop.f32.mrb[51].mxu0  ;;  %v2258_v48 = vpop.f32.mrb[59].mxu1 }
 0x748   :  { %v2272_v16 = vrot.slane %v2264_v39, %v4851_v9  ;;  %v2279_v41 = vrot.slane %v2265_v18, %v4851_v9 }
 0x74a   :  { %v2280_v22 = vcombine.low %v2272_v16, %v2279_v41 }
 0x74c   :  { %v2282_v49 = vadd.f32 %v2280_v22, %v1088_v11 }
 0x74e   :  { %v3815_v32 = vmul.f32 -1.442695, %v2282_v49  ;;  %v2290_v42 = vrot.slane %v2282_v49, 2  ;;  %v2301_v62 = vrot.slane %v2282_v49, 6  ;;  %v2298_v12 = vrot.slane %v2282_v49, 4 }
 0x750   :  { %4285 = vpow2.f32 %v3815_v32  ;;  %v3816_v26 = vmul.f32 -1.442695, %v2290_v42  ;;  %v3817_v17 = vmul.f32 -1.442695, %v2301_v62 }
 0x752   :  { %4287 = vpow2.f32 %v3816_v26 }
 0x753   :  { %4289 = vpow2.f32 %v3817_v17 }
 0x75a   :  { %v4286_v50 = vpop.eup %4285 }
 0x75b   :  { %v2286_v51 = vadd.f32 1.0, %v4286_v50 }
 0x75c   :  { %v4288_v55 = vpop.eup %4287 }
 0x75d   :  { %4291 = vrcp.f32 %v2286_v51  ;;  %v2295_v27 = vadd.f32 1.0, %v4288_v55  ;;  %v4290_v57 = vpop.eup %4289 }
 0x75e   :  { %4293 = vtanh.f32 %v2298_v12  ;;  %v2306_v11 = vadd.f32 1.0, %v4290_v57  ;;  %v5159_v57 = vpop.permute.xlu1 %3994 }
 0x75f   :  { %4295 = vrcp.f32 %v2295_v27 }
 0x760   :  { %4297 = vrcp.f32 %v2306_v11 }
 0x767   :  { %v4292_v58 = vpop.eup %4291 }
 0x768   :  { %v4294_v8 = vpop.eup %4293 }
 0x769   :  { %v4296_v10 = vpop.eup %4295  ;;  %v2310_v63 = vmul.f32 %v4294_v8, %v4292_v58  ;;  %v3996_v58 = vunpack.i.l.bf16 %v5159_v57 }
 0x76a   :  { %v2309_v23 = vmul.f32 %v4296_v10, %v5087_v29  ;;  %v4298_v25 = vpop.eup %4297  ;;  %v4351_v29 = vld [vmem:[#allocation7 + $0x2c] ss:$16 sps:$4 sm:$0xff]  }
 0x76c   :  { %v5132_v24 = vadd.f32 %v2310_v63, %v2309_v23  ;;  %v2641_v63 = vsel %vm1469_vm2, %v5024_v19, %v3996_v58  ;;  %v4045_v23 = vld [vmem:[#allocation8] ss:$8 sps:$4 sm:$0xff]   ;;  %v4054_v19 = vld [vmem:[#allocation8 + $0x30] ss:$8 sps:$4 sm:$0xff]  }
 0x76d   :  { %v4108_v58 = vld [vmem:[#allocation8 + $0x150] ss:$8 sps:$4 sm:$0xff]  }
 0x76e   :  { %4299 = vtanh.f32 %v5132_v24 }
 0x778   :  { %v4300_v28 = vpop.eup %4299 }
 0x779   :  { %v5135_v13 = vmul.f32 %v4300_v28, %v4298_v25  ;;  %v4050_v25 = vld [vmem:[#allocation8 + $0x14] ss:$8 sps:$4 sm:$0xff]   ;;  %v2645_v28 = vpack.c.bf16 %v2641_v63, %v2641_v63 }
 0x77a   :  { %v4116_v63 = vld [vmem:[#allocation8 + $0x174] ss:$8 sps:$4 sm:$0xff]  }
 0x77b   :  { %v2315_v30 = vpack.c.bf16 %v5135_v13, %v5135_v13 }
 0x77d   :  { %3818 = vmatmul.mubr.msk.bf16.vlgmr.msra.gmra.mrb[52].mxu0 %vm1469_vm2, %v2315_v30  ;;  %3819 = vmatmul.mubr.msk.bf16.vlgmr.msra.gmra.mrb[60].mxu1 %vm1469_vm2, %v2315_v30  ;;  %v4048_v30 = vld [vmem:[#allocation8 + $0x10] ss:$8 sps:$4 sm:$0xff]  }
 0x77e   :  { %2461 = vmatpush1.bf16.msra.mxu0 %v5096_v7  ;;  %2502 = vmatpush1.bf16.msra.mxu1 %v4350_v31  ;;  %v4354_v7 = vld [vmem:[#allocation7 + $0x48] ss:$16 sps:$4 sm:$0xff]   ;;  %v4053_v31 = vld [vmem:[#allocation8 + $0x24] ss:$8 sps:$4 sm:$0xff]  }
 0x77f   :  { %2462 = vmatprep.subr.bf16.mxu0 %v5100_v20  ;;  %2503 = vmatprep.subr.bf16.mxu1 %v4351_v29  ;;  %v4355_v20 = vld [vmem:[#allocation7 + $0x6c] ss:$16 sps:$4 sm:$0xff]   ;;  %v4051_v29 = vld [vmem:[#allocation8 + $0x20] ss:$8 sps:$4 sm:$0xff]  }
 0x780   :  { %2492 = vmatprep.mubr.bf16.mxu0 %v4482_v0  ;;  %2533 = vmatprep.mubr.bf16.mxu1 %v4482_v0  ;;  %v4047_v0 = vld [vmem:[#allocation8 + $0x4] ss:$8 sps:$4 sm:$0xff]  }
 0x782   :  { %2463 = vmatpush1.bf16.msra.mxu0 %v5106_v1  ;;  %2504 = vmatpush1.bf16.msra.mxu1 %v4352_v6  ;;  %v4056_v6 = vld [vmem:[#allocation8 + $0x34] ss:$8 sps:$4 sm:$0xff]  }
 0x783   :  { %2464 = vmatprep.subr.bf16.mxu0 %v5110_v35  ;;  %2505 = vmatprep.subr.bf16.mxu1 %v4353_v45  ;;  %v4059_v45 = vld [vmem:[#allocation8 + $0x44] ss:$8 sps:$4 sm:$0xff]  }
 0x786   :  { %2465 = vmatpush1.bf16.msra.mxu0 %v5114_v43  ;;  %2506 = vmatpush1.bf16.msra.mxu1 %v4354_v7  ;;  %v4057_v7 = vld [vmem:[#allocation8 + $0x40] ss:$8 sps:$4 sm:$0xff]  }
 0x787   :  { %2466 = vmatprep.subr.bf16.mxu0 %v5118_v44  ;;  %2507 = vmatprep.subr.bf16.mxu1 %v4355_v20  ;;  %v4062_v20 = vld [vmem:[#allocation8 + $0x54] ss:$8 sps:$4 sm:$0xff]  }
 0x78a   :  { %2467 = vmatpush1.bf16.msra.mxu0 %v5122_v36  ;;  %2508 = vmatpush1.bf16.msra.mxu1 %v4356_v46  ;;  %v4060_v46 = vld [vmem:[#allocation8 + $0x50] ss:$8 sps:$4 sm:$0xff]  }
 0x78b   :  { %3032 = vmatprep.subr.bf16.mxu0 %v4047_v0  ;;  %v4065_v0 = vld [vmem:[#allocation8 + $0x64] ss:$8 sps:$4 sm:$0xff]  }
 0x850   :  { %v2353_v1 = vpop.f32.mrb[52].mxu0  ;;  %v2394_v37 = vpop.f32.mrb[60].mxu1 }
 0x851   :  { %v2355_v38 = vpop.f32.mrb[53].mxu0  ;;  %v2396_v35 = vpop.f32.mrb[61].mxu1 }
 0x852   :  { %v2405_v21 = vcombine.low %v2353_v1, %v2355_v38  ;;  %v2406_v47 = vcombine.low %v2394_v37, %v2396_v35  ;;  %v2357_v39 = vpop.f32.mrb[54].mxu0  ;;  %v2398_v43 = vpop.f32.mrb[62].mxu1  ;;  %v4063_v1 = vld [vmem:[#allocation8 + $0x60] ss:$8 sps:$4 sm:$0xff]   ;;  %v4068_v37 = vld [vmem:[#allocation8 + $0x74] ss:$8 sps:$4 sm:$0xff]  }
 0x853   :  { %v2358_v18 = vpop.f32.mrb[55].mxu0  ;;  %v2399_v14 = vpop.f32.mrb[63].mxu1  ;;  %v4066_v38 = vld [vmem:[#allocation8 + $0x70] ss:$8 sps:$4 sm:$0xff]   ;;  %v4071_v35 = vld [vmem:[#allocation8 + $0x84] ss:$8 sps:$4 sm:$0xff]  }
 0x854   :  { %v2413_v44 = vrot.slane %v2405_v21, %v4851_v9  ;;  %v2420_v15 = vrot.slane %v2406_v47, %v4851_v9  ;;  %v4069_v21 = vld [vmem:[#allocation8 + $0x80] ss:$8 sps:$4 sm:$0xff]   ;;  %v4074_v47 = vld [vmem:[#allocation8 + $0x94] ss:$8 sps:$4 sm:$0xff]   ;;  %v4072_v39 = vld [vmem:[#allocation8 + $0x90] ss:$8 sps:$4 sm:$0xff]  }
 0x855   :  { %v4077_v43 = vld [vmem:[#allocation8 + $0xa4] ss:$8 sps:$4 sm:$0xff]   ;;  %v4075_v18 = vld [vmem:[#allocation8 + $0xa0] ss:$8 sps:$4 sm:$0xff]   ;;  %v4080_v14 = vld [vmem:[#allocation8 + $0xb4] ss:$8 sps:$4 sm:$0xff]  }
 0x856   :  { %v2421_v40 = vcombine.low %v2413_v44, %v2420_v15  ;;  %v4078_v44 = vld [vmem:[#allocation8 + $0xb0] ss:$8 sps:$4 sm:$0xff]   ;;  %v4083_v15 = vld [vmem:[#allocation8 + $0xc4] ss:$8 sps:$4 sm:$0xff]  }
 0x858   :  { %v2423_v36 = vadd.f32 %v2421_v40, %v1224_v5  ;;  %v4081_v40 = vld [vmem:[#allocation8 + $0xc0] ss:$8 sps:$4 sm:$0xff]  }
 0x85a   :  { %v3820_v48 = vmul.f32 -1.442695, %v2423_v36  ;;  %v2431_v16 = vrot.slane %v2423_v36, 2  ;;  %v2442_v22 = vrot.slane %v2423_v36, 6  ;;  %v2439_v42 = vrot.slane %v2423_v36, 4 }
 0x85b   :  { %v4086_v36 = vld [vmem:[#allocation8 + $0xd4] ss:$8 sps:$4 sm:$0xff]  }
 0x85c   :  { %4301 = vpow2.f32 %v3820_v48  ;;  %v3821_v41 = vmul.f32 -1.442695, %v2431_v16  ;;  %v3822_v49 = vmul.f32 -1.442695, %v2442_v22  ;;  %v4084_v48 = vld [vmem:[#allocation8 + $0xd0] ss:$8 sps:$4 sm:$0xff]  }
 0x85d   :  { %v4089_v16 = vld [vmem:[#allocation8 + $0xe4] ss:$8 sps:$4 sm:$0xff]   ;;  %v4092_v22 = vld [vmem:[#allocation8 + $0xf4] ss:$8 sps:$4 sm:$0xff]  }
 0x85e   :  { %4303 = vpow2.f32 %v3821_v41  ;;  %v4087_v41 = vld [vmem:[#allocation8 + $0xe0] ss:$8 sps:$4 sm:$0xff]  }
 0x85f   :  { %4305 = vpow2.f32 %v3822_v49  ;;  %v3997_v49 = vunpack.i.h.bf16 %v5159_v57  ;;  %v4110_v57 = vld [vmem:[#allocation8 + $0x154] ss:$8 sps:$4 sm:$0xff]  }
 0x866   :  { %v4302_v32 = vpop.eup %4301 }
 0x867   :  { %v2427_v26 = vadd.f32 1.0, %v4302_v32  ;;  %v4090_v32 = vld [vmem:[#allocation8 + $0xf0] ss:$8 sps:$4 sm:$0xff]  }
 0x868   :  { %v4304_v62 = vpop.eup %4303 }
 0x869   :  { %4307 = vrcp.f32 %v2427_v26  ;;  %v2436_v17 = vadd.f32 1.0, %v4304_v62  ;;  %v4306_v50 = vpop.eup %4305  ;;  %v4093_v62 = vld [vmem:[#allocation8 + $0x100] ss:$8 sps:$4 sm:$0xff]  }
 0x86a   :  { %4309 = vtanh.f32 %v2439_v42  ;;  %v2447_v5 = vadd.f32 1.0, %v4306_v50  ;;  %v2640_v42 = vsel %vm1469_vm2, %v4958_v61, %v3997_v49  ;;  %v4098_v50 = vld [vmem:[#allocation8 + $0x114] ss:$8 sps:$4 sm:$0xff]   ;;  %v4105_v61 = vld [vmem:[#allocation8 + $0x140] ss:$8 sps:$4 sm:$0xff]  }
 0x86b   :  { %4311 = vrcp.f32 %v2436_v17  ;;  %v2644_v26 = vpack.c.bf16 %v2640_v42, %v2640_v42  ;;  %v4095_v17 = vld [vmem:[#allocation8 + $0x104] ss:$8 sps:$4 sm:$0xff]  }
 0x86c   :  { %4313 = vrcp.f32 %v2447_v5  ;;  %v4104_v5 = vld [vmem:[#allocation8 + $0x134] ss:$8 sps:$4 sm:$0xff]  }
 0x873   :  { %v4308_v12 = vpop.eup %4307 }
 0x874   :  { %v4310_v3 = vpop.eup %4309 }
 0x875   :  { %v4312_v4 = vpop.eup %4311  ;;  %v2451_v51 = vmul.f32 %v4310_v3, %v4308_v12  ;;  %v4096_v12 = vld [vmem:[#allocation8 + $0x110] ss:$8 sps:$4 sm:$0xff]   ;;  %v4101_v3 = vld [vmem:[#allocation8 + $0x124] ss:$8 sps:$4 sm:$0xff]  }
 0x876   :  { %v2450_v55 = vmul.f32 %v4312_v4, %v5132_v24  ;;  %v4314_v8 = vpop.eup %4313  ;;  %v4099_v4 = vld [vmem:[#allocation8 + $0x120] ss:$8 sps:$4 sm:$0xff]  }
 0x878   :  { %v5156_v27 = vadd.f32 %v2451_v51, %v2450_v55  ;;  %v4102_v51 = vld [vmem:[#allocation8 + $0x130] ss:$8 sps:$4 sm:$0xff]   ;;  %v4107_v55 = vld [vmem:[#allocation8 + $0x144] ss:$8 sps:$4 sm:$0xff]  }
 0x87a   :  { %4315 = vtanh.f32 %v5156_v27 }
 0x884   :  { %v4316_v10 = vpop.eup %4315 }
 0x885   :  { %v5162_v11 = vmul.f32 %v4316_v10, %v4314_v8  ;;  %v4113_v8 = vld [vmem:[#allocation8 + $0x164] ss:$8 sps:$4 sm:$0xff]   ;;  %v4111_v10 = vld [vmem:[#allocation8 + $0x160] ss:$8 sps:$4 sm:$0xff]  }
 0x887   :  { %v2456_v24 = vpack.c.bf16 %v5162_v11, %v5162_v11 }
 0x889   :  { %3823 = vmatmul.mubr.msk.bf16.vlgmr.msra.gmra.mrb[56].mxu0 %vm1469_vm2, %v2456_v24  ;;  %3824 = vmatmul.mubr.msk.bf16.vlgmr.msra.gmra.mrb[64].mxu1 %vm1469_vm2, %v2456_v24  ;;  %v4119_v24 = vld [vmem:[#allocation8 + $0x184] ss:$8 sps:$4 sm:$0xff]  }
 0x88a   :  { %3033 = vmatpush1.bf16.msra.mxu0 %v4045_v23  ;;  %3064 = vmatprep.mubr.bf16.mxu0 %v2645_v28  ;;  %v4114_v23 = vld [vmem:[#allocation8 + $0x170] ss:$8 sps:$4 sm:$0xff]   ;;  %v4122_v28 = vld [vmem:[#allocation8 + $0x194] ss:$8 sps:$4 sm:$0xff]  }
 0x88b   :  { %3034 = vmatprep.subr.bf16.mxu0 %v4050_v25  ;;  %v4117_v25 = vld [vmem:[#allocation8 + $0x180] ss:$8 sps:$4 sm:$0xff]  }
 0x88e   :  { %3035 = vmatpush1.bf16.msra.mxu0 %v4048_v30  ;;  %v4120_v30 = vld [vmem:[#allocation8 + $0x190] ss:$8 sps:$4 sm:$0xff]  }
 0x88f   :  { %3036 = vmatprep.subr.bf16.mxu0 %v4053_v31  ;;  %v4125_v31 = vld [vmem:[#allocation8 + $0x1a4] ss:$8 sps:$4 sm:$0xff]  }
 0x892   :  { %3037 = vmatpush1.bf16.msra.mxu0 %v4051_v29  ;;  %v4123_v29 = vld [vmem:[#allocation8 + $0x1a0] ss:$8 sps:$4 sm:$0xff]  }
 0x893   :  { %3038 = vmatprep.subr.bf16.mxu0 %v4056_v6  ;;  %v4128_v6 = vld [vmem:[#allocation8 + $0x1b4] ss:$8 sps:$4 sm:$0xff]  }
 0x896   :  { %3039 = vmatpush1.bf16.msra.mxu0 %v4054_v19  ;;  %v4126_v19 = vld [vmem:[#allocation8 + $0x1b0] ss:$8 sps:$4 sm:$0xff]  }
 0x897   :  { %3040 = vmatprep.subr.bf16.mxu0 %v4059_v45  ;;  %v4131_v45 = vld [vmem:[#allocation8 + $0x1c4] ss:$8 sps:$4 sm:$0xff]  }
 0x89a   :  { %3041 = vmatpush1.bf16.msra.mxu0 %v4057_v7  ;;  %v4129_v7 = vld [vmem:[#allocation8 + $0x1c0] ss:$8 sps:$4 sm:$0xff]  }
 0x89b   :  { %3042 = vmatprep.subr.bf16.mxu0 %v4062_v20  ;;  %v4134_v20 = vld [vmem:[#allocation8 + $0x1d4] ss:$8 sps:$4 sm:$0xff]  }
 0x89e   :  { %3043 = vmatpush1.bf16.msra.mxu0 %v4060_v46  ;;  %v4132_v46 = vld [vmem:[#allocation8 + $0x1d0] ss:$8 sps:$4 sm:$0xff]  }
 0x89f   :  { %3044 = vmatprep.subr.bf16.mxu0 %v4065_v0  ;;  %v4137_v0 = vld [vmem:[#allocation8 + $0x1e4] ss:$8 sps:$4 sm:$0xff]  }
 0x8a2   :  { %3045 = vmatpush1.bf16.msra.mxu0 %v4063_v1  ;;  %v4135_v1 = vld [vmem:[#allocation8 + $0x1e0] ss:$8 sps:$4 sm:$0xff]  }
 0x8a3   :  { %3046 = vmatprep.subr.bf16.mxu0 %v4068_v37 }
 0x8a6   :  { %3047 = vmatpush1.bf16.msra.mxu0 %v4066_v38 }
 0x8a7   :  { %3048 = vmatprep.subr.bf16.mxu0 %v4071_v35 }
 0x8aa   :  { %3049 = vmatpush1.bf16.msra.mxu0 %v4069_v21 }
 0x8ab   :  { %3050 = vmatprep.subr.bf16.mxu0 %v4074_v47 }
 0x8ae   :  { %3051 = vmatpush1.bf16.msra.mxu0 %v4072_v39 }
 0x8af   :  { %3052 = vmatprep.subr.bf16.mxu0 %v4077_v43 }
 0x8b2   :  { %3053 = vmatpush1.bf16.msra.mxu0 %v4075_v18 }
 0x8b3   :  { %3054 = vmatprep.subr.bf16.mxu0 %v4080_v14 }
 0x8b6   :  { %3055 = vmatpush1.bf16.msra.mxu0 %v4078_v44 }
 0x8b7   :  { %3056 = vmatprep.subr.bf16.mxu0 %v4083_v15 }
 0x8ba   :  { %3057 = vmatpush1.bf16.msra.mxu0 %v4081_v40 }
 0x8bb   :  { %3058 = vmatprep.subr.bf16.mxu0 %v4086_v36 }
 0x8be   :  { %3059 = vmatpush1.bf16.msra.mxu0 %v4084_v48 }
 0x8bf   :  { %3060 = vmatprep.subr.bf16.mxu0 %v4089_v16 }
 0x8c2   :  { %3061 = vmatpush1.bf16.msra.mxu0 %v4087_v41 }
 0x8c3   :  { %3062 = vmatprep.subr.bf16.mxu0 %v4092_v22 }
 0x8c6   :  { %3063 = vmatpush1.bf16.msra.mxu0 %v4090_v32 }
 0x8c7   :  { %3073 = vmatprep.subr.bf16.mxu0 %v4095_v17 }
 0x8c9   :  { %3065 = vmatmul.mubr.bf16.vlgmr.msra.gmra.mrb[60].mxu0 %v2644_v26 }
 0x8ca   :  { %3074 = vmatpush1.bf16.msra.mxu0 %v4093_v62 }
 0x8cb   :  { %3075 = vmatprep.subr.bf16.mxu0 %v4098_v50 }
 0x8ce   :  { %3076 = vmatpush1.bf16.msra.mxu0 %v4096_v12 }
 0x8cf   :  { %3077 = vmatprep.subr.bf16.mxu0 %v4101_v3 }
 0x8d2   :  { %3078 = vmatpush1.bf16.msra.mxu0 %v4099_v4 }
 0x8d3   :  { %3079 = vmatprep.subr.bf16.mxu0 %v4104_v5 }
 0x8d6   :  { %3080 = vmatpush1.bf16.msra.mxu0 %v4102_v51 }
 0x8d7   :  { %3081 = vmatprep.subr.bf16.mxu0 %v4107_v55  ;;  %v4140_v55 = vld [vmem:[#allocation8 + $0x1f4] ss:$8 sps:$4 sm:$0xff]  }
 0x8da   :  { %3082 = vmatpush1.bf16.msra.mxu0 %v4105_v61  ;;  %v4138_v61 = vld [vmem:[#allocation8 + $0x1f0] ss:$8 sps:$4 sm:$0xff]  }
 0x8db   :  { %3083 = vmatprep.subr.bf16.mxu0 %v4110_v57 }
 0x8de   :  { %3084 = vmatpush1.bf16.msra.mxu0 %v4108_v58 }
 0x8df   :  { %3085 = vmatprep.subr.bf16.mxu0 %v4113_v8  ;;  %v4141_v8 = vld [vmem:[%s5388_s10] ss:$8 sps:$4 sm:$0xff]  }
 0x8e2   :  { %3086 = vmatpush1.bf16.msra.mxu0 %v4111_v10 }
 0x8e3   :  { %3087 = vmatprep.subr.bf16.mxu0 %v4116_v63  ;;  %v4146_v63 = vld [vmem:[%s5388_s10 + $0x14] ss:$8 sps:$4 sm:$0xff]  }
 0x8e6   :  { %3088 = vmatpush1.bf16.msra.mxu0 %v4114_v23  ;;  %v2625_v23 = vrot.slane %v5135_v13, %v4851_v9 }
 0x8e7   :  { %3089 = vmatprep.subr.bf16.mxu0 %v4119_v24 }
 0x8ea   :  { %3090 = vmatpush1.bf16.msra.mxu0 %v4117_v25  ;;  %v4144_v25 = vld [vmem:[%s5388_s10 + $0x10] ss:$8 sps:$4 sm:$0xff]  }
 0x8eb   :  { %3091 = vmatprep.subr.bf16.mxu0 %v4122_v28 }
 0x8ee   :  { %3092 = vmatpush1.bf16.msra.mxu0 %v4120_v30 }
 0x8ef   :  { %3093 = vmatprep.subr.bf16.mxu0 %v4125_v31 }
 0x8f2   :  { %3094 = vmatpush1.bf16.msra.mxu0 %v4123_v29 }
 0x8f3   :  { %3095 = vmatprep.subr.bf16.mxu0 %v4128_v6 }
 0x8f6   :  { %3096 = vmatpush1.bf16.msra.mxu0 %v4126_v19 }
 0x8f7   :  { %3097 = vmatprep.subr.bf16.mxu0 %v4131_v45 }
 0x8fa   :  { %3098 = vmatpush1.bf16.msra.mxu0 %v4129_v7  ;;  %v4149_v7 = vld [vmem:[%s5388_s10 + $0x24] ss:$8 sps:$4 sm:$0xff]  }
 0x8fb   :  { %3099 = vmatprep.subr.bf16.mxu0 %v4134_v20  ;;  %v4147_v20 = vld [vmem:[%s5388_s10 + $0x20] ss:$8 sps:$4 sm:$0xff]  }
 0x8fe   :  { %3100 = vmatpush1.bf16.msra.mxu0 %v4132_v46  ;;  %v4155_v46 = vld [vmem:[%s5388_s10 + $0x44] ss:$8 sps:$4 sm:$0xff]  }
 0x8ff   :  { %3101 = vmatprep.subr.bf16.mxu0 %v4137_v0  ;;  %v4153_v0 = vld [vmem:[%s5388_s10 + $0x40] ss:$8 sps:$4 sm:$0xff]  }
 0x902   :  { %3102 = vmatpush1.bf16.msra.mxu0 %v4135_v1  ;;  %v4158_v1 = vld [vmem:[%s5388_s10 + $0x54] ss:$8 sps:$4 sm:$0xff]  }
 0x903   :  { %3103 = vmatprep.subr.bf16.mxu0 %v4140_v55 }
 0x906   :  { %3104 = vmatpush1.bf16.msra.mxu0 %v4138_v61 }
 0x95c   :  { %v2494_v37 = vpop.f32.mrb[56].mxu0  ;;  %v2535_v38 = vpop.f32.mrb[64].mxu1 }
 0x95d   :  { %v2496_v35 = vpop.f32.mrb[57].mxu0  ;;  %v2537_v21 = vpop.f32.mrb[65].mxu1 }
 0x95e   :  { %v2546_v47 = vcombine.low %v2494_v37, %v2496_v35  ;;  %v2547_v39 = vcombine.low %v2535_v38, %v2537_v21  ;;  %v2498_v43 = vpop.f32.mrb[58].mxu0  ;;  %v2539_v18 = vpop.f32.mrb[66].mxu1  ;;  %v4156_v37 = vld [vmem:[%s5388_s10 + $0x50] ss:$8 sps:$4 sm:$0xff]   ;;  %v4161_v38 = vld [vmem:[%s5388_s10 + $0x64] ss:$8 sps:$4 sm:$0xff]  }
 0x95f   :  { %v2499_v14 = vpop.f32.mrb[59].mxu0  ;;  %v2540_v44 = vpop.f32.mrb[67].mxu1  ;;  %v4159_v35 = vld [vmem:[%s5388_s10 + $0x60] ss:$8 sps:$4 sm:$0xff]   ;;  %v4164_v21 = vld [vmem:[%s5388_s10 + $0x74] ss:$8 sps:$4 sm:$0xff]  }
 0x960   :  { %v2554_v15 = vrot.slane %v2546_v47, %v4851_v9  ;;  %v2561_v40 = vrot.slane %v2547_v39, %v4851_v9  ;;  %v4162_v47 = vld [vmem:[%s5388_s10 + $0x70] ss:$8 sps:$4 sm:$0xff]   ;;  %v4167_v39 = vld [vmem:[%s5388_s10 + $0x84] ss:$8 sps:$4 sm:$0xff]   ;;  %v4165_v43 = vld [vmem:[%s5388_s10 + $0x80] ss:$8 sps:$4 sm:$0xff]  }
 0x961   :  { %v4170_v18 = vld [vmem:[%s5388_s10 + $0x94] ss:$8 sps:$4 sm:$0xff]   ;;  %v4168_v14 = vld [vmem:[%s5388_s10 + $0x90] ss:$8 sps:$4 sm:$0xff]   ;;  %v4173_v44 = vld [vmem:[%s5388_s10 + $0xa4] ss:$8 sps:$4 sm:$0xff]  }
 0x962   :  { %v2562_v36 = vcombine.low %v2554_v15, %v2561_v40  ;;  %v4171_v15 = vld [vmem:[%s5388_s10 + $0xa0] ss:$8 sps:$4 sm:$0xff]   ;;  %v4176_v40 = vld [vmem:[%s5388_s10 + $0xb4] ss:$8 sps:$4 sm:$0xff]  }
 0x964   :  { %v2564_v48 = vadd.f32 %v2562_v36, %v1360_v60  ;;  %v4174_v36 = vld [vmem:[%s5388_s10 + $0xb0] ss:$8 sps:$4 sm:$0xff]  }
 0x966   :  { %v3825_v16 = vmul.f32 -1.442695, %v2564_v48  ;;  %v2572_v41 = vrot.slane %v2564_v48, 2  ;;  %v2583_v49 = vrot.slane %v2564_v48, 6  ;;  %v2580_v26 = vrot.slane %v2564_v48, 4 }
 0x967   :  { %v4179_v48 = vld [vmem:[%s5388_s10 + $0xc4] ss:$8 sps:$4 sm:$0xff]  }
 0x968   :  { %4317 = vpow2.f32 %v3825_v16  ;;  %v3826_v22 = vmul.f32 -1.442695, %v2572_v41  ;;  %v3827_v32 = vmul.f32 -1.442695, %v2583_v49  ;;  %v4177_v16 = vld [vmem:[%s5388_s10 + $0xc0] ss:$8 sps:$4 sm:$0xff]  }
 0x969   :  { %v4182_v41 = vld [vmem:[%s5388_s10 + $0xd4] ss:$8 sps:$4 sm:$0xff]   ;;  %v4185_v49 = vld [vmem:[%s5388_s10 + $0xe4] ss:$8 sps:$4 sm:$0xff]  }
 0x96a   :  { %4319 = vpow2.f32 %v3826_v22  ;;  %v4180_v22 = vld [vmem:[%s5388_s10 + $0xd0] ss:$8 sps:$4 sm:$0xff]  }
 0x96b   :  { %4321 = vpow2.f32 %v3827_v32  ;;  %v4183_v32 = vld [vmem:[%s5388_s10 + $0xe0] ss:$8 sps:$4 sm:$0xff]  }
 0x972   :  { %v4318_v42 = vpop.eup %4317 }
 0x973   :  { %v2568_v62 = vadd.f32 1.0, %v4318_v42  ;;  %v4188_v42 = vld [vmem:[%s5388_s10 + $0xf4] ss:$8 sps:$4 sm:$0xff]  }
 0x974   :  { %v4320_v17 = vpop.eup %4319 }
 0x975   :  { %4323 = vrcp.f32 %v2568_v62  ;;  %v2577_v50 = vadd.f32 1.0, %v4320_v17  ;;  %v4322_v12 = vpop.eup %4321 }
 0x976   :  { %4325 = vtanh.f32 %v2580_v26  ;;  %v2588_v60 = vadd.f32 1.0, %v4322_v12  ;;  %v4186_v26 = vld [vmem:[%s5388_s10 + $0xf0] ss:$8 sps:$4 sm:$0xff]  }
 0x977   :  { %4327 = vrcp.f32 %v2577_v50 }
 0x978   :  { %4329 = vrcp.f32 %v2588_v60 }
 0x97f   :  { %v4324_v3 = vpop.eup %4323 }
 0x980   :  { %v4326_v34 = vpop.eup %4325 }
 0x981   :  { %v4328_v2 = vpop.eup %4327  ;;  %v2592_v5 = vmul.f32 %v4326_v34, %v4324_v3 }
 0x982   :  { %v2591_v4 = vmul.f32 %v4328_v2, %v5156_v27  ;;  %v4330_v57 = vpop.eup %4329  ;;  %v4143_v27 = vld [vmem:[%s5388_s10 + $0x4] ss:$8 sps:$4 sm:$0xff]  }
 0x983   :  { %3382 = vmatprep.subr.bf16.mxu1 %v4143_v27 }
 0x984   :  { %v5179_v51 = vadd.f32 %v2592_v5, %v2591_v4  ;;  %3383 = vmatpush1.bf16.msra.mxu1 %v4141_v8 }
 0x985   :  { %3384 = vmatprep.subr.bf16.mxu1 %v4146_v63 }
 0x986   :  { %4331 = vtanh.f32 %v5179_v51  ;;  %v3678_v5 = vrot.slane %v5179_v51, %v4851_v9 }
 0x988   :  { %3385 = vmatpush1.bf16.msra.mxu1 %v4144_v25 }
 0x989   :  { %3386 = vmatprep.subr.bf16.mxu1 %v4149_v7 }
 0x98c   :  { %3387 = vmatpush1.bf16.msra.mxu1 %v4147_v20 }
 0x990   :  { %v4332_v58 = vpop.eup %4331 }
 0x991   :  { %v2595_v10 = vmul.f32 %v4332_v58, %v4330_v57 }
 0x993   :  { %v2636_v24 = vrot.slane %v2595_v10, %v4851_v9 }
 0x995   :  { %v3998_v28 = vpack.i.bf16 %v2625_v23, %v2636_v24 }
 0x997   :  { %3999 = vrot.lane.b32.xlu1 %v3998_v28, %s4485_s7 }
 0xa09   :  { %v4000_v30 = vpop.permute.xlu1 %3999 }
 0xa0a   :  { %v4002_v31 = vunpack.i.h.bf16 %v4000_v30  ;;  %v4001_v29 = vunpack.i.l.bf16 %v4000_v30 }
 0xa0c   :  { %v2642_v6 = vsel %vm1469_vm2, %v5090_v33, %v4002_v31  ;;  %v2643_v13 = vsel %vm1469_vm2, %v5162_v11, %v4001_v29  ;;  %v4152_v33 = vld [vmem:[%s5388_s10 + $0x34] ss:$8 sps:$4 sm:$0xff]   ;;  %v4150_v11 = vld [vmem:[%s5388_s10 + $0x30] ss:$8 sps:$4 sm:$0xff]  }
 0xa0d   :  { %v2646_v19 = vpack.c.bf16 %v2642_v6, %v2642_v6  ;;  %v2647_v45 = vpack.c.bf16 %v2643_v13, %v2643_v13  ;;  %3388 = vmatprep.subr.bf16.mxu1 %v4152_v33 }
 0xa0e   :  { %3389 = vmatpush1.bf16.msra.mxu1 %v4150_v11 }
 0xa0f   :  { %3105 = vmatprep.mubr.bf16.mxu0 %v2647_v45  ;;  %3390 = vmatprep.subr.bf16.mxu1 %v4155_v46 }
 0xa10   :  { %3106 = vmatmul.mubr.bf16.vlgmr.msra.gmra.mrb[60].mxu0 %v2646_v19 }
 0xa12   :  { %3391 = vmatpush1.bf16.msra.mxu1 %v4153_v0 }
 0xa13   :  { %3392 = vmatprep.subr.bf16.mxu1 %v4158_v1 }
 0xa16   :  { %3393 = vmatpush1.bf16.msra.mxu1 %v4156_v37 }
 0xa17   :  { %3394 = vmatprep.subr.bf16.mxu1 %v4161_v38 }
 0xa1a   :  { %3395 = vmatpush1.bf16.msra.mxu1 %v4159_v35 }
 0xa1b   :  { %3396 = vmatprep.subr.bf16.mxu1 %v4164_v21 }
 0xa1e   :  { %3397 = vmatpush1.bf16.msra.mxu1 %v4162_v47 }
 0xa1f   :  { %3398 = vmatprep.subr.bf16.mxu1 %v4167_v39  ;;  %v5293_v39 = vld [vmem:[#allocation10] sm:$0x3f] }
 0xa22   :  { %3399 = vmatpush1.bf16.msra.mxu1 %v4165_v43  ;;  %v5295_v43 = vld [vmem:[#allocation10 + $0x8] sm:$0x3f] }
 0xa23   :  { %3400 = vmatprep.subr.bf16.mxu1 %v4170_v18  ;;  %v3163_v18 = vrot.slane %v5293_v39, %v4821_v53 }
 0xa26   :  { %3401 = vmatpush1.bf16.msra.mxu1 %v4168_v14 }
 0xa27   :  { %3402 = vmatprep.subr.bf16.mxu1 %v4173_v44  ;;  %v3167_v44 = vrot.slane %v5295_v43, %v4821_v53  ;;  %v4189_v53 = vld [vmem:[%s5389_s11 + $0x40] sm:$0xff]  }
 0xa2a   :  { %3403 = vmatpush1.bf16.msra.mxu1 %v4171_v15 }
 0xa2b   :  { %3404 = vmatprep.subr.bf16.mxu1 %v4176_v40 }
 0xa2e   :  { %3405 = vmatpush1.bf16.msra.mxu1 %v4174_v36  ;;  %v3173_v36 = vrot.slane %v5293_v39, %v4830_v56 }
 0xa2f   :  { %3406 = vmatprep.subr.bf16.mxu1 %v4179_v48 }
 0xa32   :  { %3407 = vmatpush1.bf16.msra.mxu1 %v4177_v16  ;;  %v3177_v16 = vrot.slane %v5295_v43, %v4830_v56  ;;  %v4191_v56 = vld [vmem:[%s5389_s11 + $0x48] sm:$0xff]  }
 0xa33   :  { %3408 = vmatprep.subr.bf16.mxu1 %v4182_v41 }
 0xa36   :  { %3409 = vmatpush1.bf16.msra.mxu1 %v4180_v22 }
 0xa37   :  { %3410 = vmatprep.subr.bf16.mxu1 %v4185_v49 }
 0xa3a   :  { %3411 = vmatpush1.bf16.msra.mxu1 %v4183_v32 }
 0xa3b   :  { %3412 = vmatprep.subr.bf16.mxu1 %v4188_v42 }
 0xa3e   :  { %3413 = vmatpush1.bf16.msra.mxu1 %v4186_v26 }
 0xa3f   :  { %3941 = vmatprep.subr.bf16.mxu1 %v4189_v53 }
 0xae3   :  { %v3107_v62 = vpop.f32.mrb[60].mxu0 }
 0xae4   :  { %v3117_v17 = vsel %vm3116_vm3, %v3107_v62, 0.0  ;;  %3668 = vrot.lane.b32.xlu1 %v3107_v62, %s4485_s7  ;;  %v3109_v50 = vpop.f32.mrb[61].mxu0 }
 0xae5   :  { %v3118_v12 = vrot.slane %v3117_v17, 4  ;;  %v3124_v3 = vsel %vm3116_vm3, %v3109_v50, 0.0  ;;  %3664 = vrot.lane.b32.xlu0 %v3109_v50, %s4486_s23  ;;  %v3111_v34 = vpop.f32.mrb[62].mxu0 }
 0xae6   :  { %v3125_v2 = vrot.slane %v3124_v3, 4  ;;  %v3112_v60 = vpop.f32.mrb[63].mxu0  ;;  %v4196_v34 = vld [vmem:[%s5389_s11 + $0x18] sm:$0xff]  }
 0xae7   :  { %v3119_v4 = vadd.f32 %v3118_v12, %v3117_v17  ;;  %v4192_v17 = vld [vmem:[%s5389_s11 + $0x8] sm:$0xff]   ;;  %v4194_v12 = vld [vmem:[%s5389_s11 + $0x10] sm:$0xff]   ;;  %v4198_v60 = vld [vmem:[%s5389_s11 + $0x20] sm:$0xff]  }
 0xae8   :  { %v3126_v55 = vadd.f32 %v3125_v2, %v3124_v3  ;;  %v4195_v3 = vld [vmem:[%s5389_s11 + $0x58] sm:$0xff]   ;;  %v4197_v2 = vld [vmem:[%s5389_s11 + $0x60] sm:$0xff]  }
 0xae9   :  { %v3120_v61 = vrot.slane %v3119_v4, 2  ;;  %3679 = vrot.lane.b32.xlu0 %v3678_v5, %s4486_s23  ;;  %v4200_v5 = vld [vmem:[%s5389_s11 + $0x28] sm:$0xff]  }
 0xaea   :  { %v3127_v57 = vrot.slane %v3126_v55, 2 }
 0xaeb   :  { %v3121_v58 = vadd.f32 %v3120_v61, %v3119_v4  ;;  %v4199_v4 = vld [vmem:[%s5389_s11 + $0x68] sm:$0xff]   ;;  %v4202_v61 = vld [vmem:[%s5389_s11 + $0x30] sm:$0xff]  }
 0xaec   :  { %v3128_v8 = vadd.f32 %v3127_v57, %v3126_v55  ;;  %v4201_v55 = vld [vmem:[%s5389_s11 + $0x70] sm:$0xff]   ;;  %v4203_v57 = vld [vmem:[%s5389_s11 + $0x78] sm:$0xff]  }
 0xaed   :  { %v3122_v27 = vrot.slane %v3121_v58, 1 }
 0xaee   :  { %v3129_v10 = vrot.slane %v3128_v8, 1 }
 0xaef   :  { %v3123_v63 = vadd.f32 %v3122_v27, %v3121_v58  ;;  %v4204_v58 = vld [vmem:[%s5389_s11 + $0x38] sm:$0xff]   ;;  %v3221_v27 = vrot.slane %v5295_v43, %v4824_v54 }
 0xaf0   :  { %v3130_v23 = vadd.f32 %v3129_v10, %v3128_v8  ;;  %v3217_v8 = vrot.slane %v5293_v39, %v4824_v54 }
 0xaf1   :  { %v3132_v24 = vmul.f32 0.5, %v3123_v63 }
 0xaf2   :  { %v3133_v25 = vmul.f32 0.5, %v3130_v23 }
 0xaf3   :  { %v3134_v28 = vsub.f32 %v3107_v62, %v3132_v24  ;;  %v4190_v62 = vld [vmem:[%s5389_s11] sm:$0xff]  }
 0xaf4   :  { %v3135_v30 = vsub.f32 %v3109_v50, %v3133_v25  ;;  %v4193_v50 = vld [vmem:[%s5389_s11 + $0x50] sm:$0xff]  }
 0xaf5   :  { %v3136_v31 = vmul.f32 %v3134_v28, %v3134_v28 }
 0xaf6   :  { %v3137_v29 = vmul.f32 %v3135_v30, %v3135_v30 }
 0xaf7   :  { %v3138_v6 = vsel %vm3116_vm3, %v3136_v31, 0.0 }
 0xaf8   :  { %v3139_v13 = vrot.slane %v3138_v6, 4  ;;  %v3145_v9 = vsel %vm3116_vm3, %v3137_v29, 0.0 }
 0xaf9   :  { %v3146_v51 = vrot.slane %v3145_v9, 4 }
 0xafa   :  { %v3140_v19 = vadd.f32 %v3139_v13, %v3138_v6 }
 0xafb   :  { %v3147_v45 = vadd.f32 %v3146_v51, %v3145_v9 }
 0xafc   :  { %v3141_v7 = vrot.slane %v3140_v19, 2 }
 0xafd   :  { %v3148_v20 = vrot.slane %v3147_v45, 2 }
 0xafe   :  { %v3142_v33 = vadd.f32 %v3141_v7, %v3140_v19 }
 0xaff   :  { %v3149_v11 = vadd.f32 %v3148_v20, %v3147_v45 }
 0xb00   :  { %v3143_v46 = vrot.slane %v3142_v33, 1 }
 0xb01   :  { %v3150_v0 = vrot.slane %v3149_v11, 1 }
 0xb02   :  { %v3144_v1 = vadd.f32 %v3143_v46, %v3142_v33 }
 0xb03   :  { %v3151_v37 = vadd.f32 %v3150_v0, %v3149_v11 }
 0xb04   :  { %v3152_v38 = vmul.f32 0.5, %v3144_v1 }
 0xb05   :  { %v3153_v35 = vmul.f32 0.5, %v3151_v37 }
 0xb06   :  { %v3154_v21 = vadd.f32 1e-05, %v3152_v38 }
 0xb07   :  { %v3155_v47 = vadd.f32 1e-05, %v3153_v35 }
 0xb08   :  { %4333 = vrsqrt.f32 %v3154_v21 }
 0xb09   :  { %4335 = vrsqrt.f32 %v3155_v47 }
 0xb12   :  { %v4334_v14 = vpop.eup %4333 }
 0xb13   :  { %v4336_v15 = vpop.eup %4335  ;;  %v3158_v40 = vmul.f32 %v4334_v14, %v3134_v28 }
 0xb14   :  { %v3159_v48 = vmul.f32 %v4336_v15, %v3135_v30 }
 0xb15   :  { %v3168_v41 = vmul.f32 %v3163_v18, %v3158_v40 }
 0xb16   :  { %v3169_v22 = vmul.f32 %v3167_v44, %v3159_v48 }
 0xb17   :  { %v3178_v49 = vadd.f32 %v3173_v36, %v3168_v41 }
 0xb18   :  { %v3179_v32 = vadd.f32 %v3177_v16, %v3169_v22 }
 0xb19   :  { %v3180_v26 = vpack.c.bf16 %v3178_v49, %v3178_v49 }
 0xb1a   :  { %v3181_v42 = vpack.c.bf16 %v3179_v32, %v3179_v32 }
 0xb1c   :  { %3414 = vmatprep.mubr.bf16.mxu1 %v3181_v42 }
 0xb1d   :  { %3415 = vmatmul.mubr.bf16.vlgmr.msra.gmra.mrb[68].mxu1 %v3180_v26 }
 0xb1e   :  { %3942 = vmatpush3.bf16.msra.mxu1 %v4190_v62 }
 0xb1f   :  { %3943 = vmatprep.subr.bf16.mxu1 %v4191_v56 }
 0xb22   :  { %3944 = vmatpush3.bf16.msra.mxu1 %v4192_v17 }
 0xb23   :  { %3945 = vmatprep.subr.bf16.mxu1 %v4193_v50  ;;  %v3479_v50 = vsub.s32 4, %v4818_v52 }
 0xb26   :  { %3946 = vmatpush3.bf16.msra.mxu1 %v4194_v12  ;;  %v3470_v12 = vrot.slane %v5293_v39, %v4833_v59 }
 0xb27   :  { %3947 = vmatprep.subr.bf16.mxu1 %v4195_v3 }
 0xb2a   :  { %3948 = vmatpush3.bf16.msra.mxu1 %v4196_v34  ;;  %v3474_v34 = vrot.slane %v5295_v43, %v4833_v59 }
 0xb2b   :  { %3949 = vmatprep.subr.bf16.mxu1 %v4197_v2 }
 0xb2e   :  { %3950 = vmatpush3.bf16.msra.mxu1 %v4198_v60 }
 0xb2f   :  { %3951 = vmatprep.subr.bf16.mxu1 %v4199_v4  ;;  %v3480_v4 = vrot.slane %v5293_v39, %v3479_v50 }
 0xb32   :  { %3952 = vmatpush3.bf16.msra.mxu1 %v4200_v5 }
 0xb33   :  { %3953 = vmatprep.subr.bf16.mxu1 %v4201_v55  ;;  %v3484_v55 = vrot.slane %v5295_v43, %v3479_v50  ;;  %v3661_v43 = vld [vmem:[%s5386_s8] sm:$0x3] }
 0xb36   :  { %3954 = vmatpush3.bf16.msra.mxu1 %v4202_v61 }
 0xb37   :  { %3955 = vmatprep.subr.bf16.mxu1 %v4203_v57 }
 0xb3a   :  { %3956 = vmatpush3.bf16.msra.mxu1 %v4204_v58 }
 0xbf0   :  { %v3416_v10 = vpop.f32.mrb[68].mxu1 }
 0xbf1   :  { %v3417_v63 = vadd.f32 %v3416_v10, %v3217_v8  ;;  %v3418_v23 = vpop.f32.mrb[69].mxu1 }
 0xbf2   :  { %v3419_v24 = vadd.f32 %v3418_v23, %v3221_v27  ;;  %v3420_v25 = vpop.f32.mrb[70].mxu1 }
 0xbf3   :  { %v3423_v28 = vmax.f32 %v3417_v63, 0.0  ;;  %v3421_v30 = vpop.f32.mrb[71].mxu1  ;;  %v3523_v63 = vsub.s32 5, %v4818_v52 }
 0xbf4   :  { %v3424_v31 = vmax.f32 %v3419_v24, 0.0  ;;  %v3665_v24 = vpop.permute.xlu0 %3664 }
 0xbf5   :  { %v3425_v29 = vsel %vm3116_vm3, %v3423_v28, 0.0  ;;  %v3524_v59 = vrot.slane %v5293_v39, %v3523_v63 }
 0xbf6   :  { %v3426_v6 = vrot.slane %v3425_v29, 4  ;;  %v3432_v13 = vsel %vm3116_vm3, %v3424_v31, 0.0 }
 0xbf7   :  { %v3433_v9 = vrot.slane %v3432_v13, 4 }
 0xbf8   :  { %v3427_v51 = vadd.f32 %v3426_v6, %v3425_v29 }
 0xbf9   :  { %v3434_v19 = vadd.f32 %v3433_v9, %v3432_v13  ;;  %v3680_v13 = vpop.permute.xlu0 %3679  ;;  %v3669_v9 = vpop.permute.xlu1 %3668 }
 0xbfa   :  { %v3428_v45 = vrot.slane %v3427_v51, 2  ;;  %v3687_v39 = vsel %vm166_vm1, %v3680_v13, 0.0 }
 0xbfb   :  { %v3435_v7 = vrot.slane %v3434_v19, 2 }
 0xbfc   :  { %v3429_v20 = vadd.f32 %v3428_v45, %v3427_v51 }
 0xbfd   :  { %v3436_v54 = vadd.f32 %v3435_v7, %v3434_v19 }
 0xbfe   :  { %v3430_v33 = vrot.slane %v3429_v20, 1 }
 0xbff   :  { %v3437_v11 = vrot.slane %v3436_v54, 1 }
 0xc00   :  { %v3431_v46 = vadd.f32 %v3430_v33, %v3429_v20 }
 0xc01   :  { %v3438_v0 = vadd.f32 %v3437_v11, %v3436_v54 }
 0xc02   :  { %v3439_v1 = vmul.f32 0.5, %v3431_v46 }
 0xc03   :  { %v3440_v37 = vmul.f32 0.5, %v3438_v0 }
 0xc04   :  { %v3441_v38 = vsub.f32 %v3423_v28, %v3439_v1 }
 0xc05   :  { %v3442_v35 = vsub.f32 %v3424_v31, %v3440_v37 }
 0xc06   :  { %v3443_v21 = vmul.f32 %v3441_v38, %v3441_v38 }
 0xc07   :  { %v3444_v47 = vmul.f32 %v3442_v35, %v3442_v35 }
 0xc08   :  { %v3445_v18 = vsel %vm3116_vm3, %v3443_v21, 0.0 }
 0xc09   :  { %v3446_v14 = vrot.slane %v3445_v18, 4  ;;  %v3452_v44 = vsel %vm3116_vm3, %v3444_v47, 0.0 }
 0xc0a   :  { %v3453_v15 = vrot.slane %v3452_v44, 4 }
 0xc0b   :  { %v3447_v40 = vadd.f32 %v3446_v14, %v3445_v18 }
 0xc0c   :  { %v3454_v36 = vadd.f32 %v3453_v15, %v3452_v44 }
 0xc0d   :  { %v3448_v48 = vrot.slane %v3447_v40, 2 }
 0xc0e   :  { %v3455_v16 = vrot.slane %v3454_v36, 2 }
 0xc0f   :  { %v3449_v41 = vadd.f32 %v3448_v48, %v3447_v40 }
 0xc10   :  { %v3456_v22 = vadd.f32 %v3455_v16, %v3454_v36 }
 0xc11   :  { %v3450_v49 = vrot.slane %v3449_v41, 1 }
 0xc12   :  { %v3457_v32 = vrot.slane %v3456_v22, 1 }
 0xc13   :  { %v3451_v42 = vadd.f32 %v3450_v49, %v3449_v41 }
 0xc14   :  { %v3458_v26 = vadd.f32 %v3457_v32, %v3456_v22 }
 0xc15   :  { %v3459_v53 = vmul.f32 0.5, %v3451_v42 }
 0xc16   :  { %v3460_v62 = vmul.f32 0.5, %v3458_v26 }
 0xc17   :  { %v3461_v56 = vadd.f32 1e-05, %v3459_v53 }
 0xc18   :  { %v3462_v17 = vadd.f32 1e-05, %v3460_v62 }
 0xc19   :  { %4337 = vrsqrt.f32 %v3461_v56 }
 0xc1a   :  { %4339 = vrsqrt.f32 %v3462_v17 }
 0xc23   :  { %v4338_v3 = vpop.eup %4337 }
 0xc24   :  { %v4340_v2 = vpop.eup %4339  ;;  %v3465_v60 = vmul.f32 %v4338_v3, %v3441_v38 }
 0xc25   :  { %v3466_v5 = vmul.f32 %v4340_v2, %v3442_v35 }
 0xc26   :  { %v3475_v61 = vmul.f32 %v3470_v12, %v3465_v60 }
 0xc27   :  { %v3476_v57 = vmul.f32 %v3474_v34, %v3466_v5 }
 0xc28   :  { %v3485_v58 = vadd.f32 %v3480_v4, %v3475_v61 }
 0xc29   :  { %v3486_v8 = vadd.f32 %v3484_v55, %v3476_v57 }
 0xc2a   :  { %v3487_v10 = vpack.c.bf16 %v3485_v58, %v3485_v58 }
 0xc2b   :  { %v3488_v27 = vpack.c.bf16 %v3486_v8, %v3486_v8 }
 0xc2d   :  { %3653 = vmatprep.mubr.bf16.mxu1 %v3488_v27 }
 0xc2e   :  { %3654 = vmatmul.mubr.bf16.vlgmr.msra.gmra.mrb[72].mxu1 %v3487_v10 }
 0xd01   :  { %v3957_v23 = vpop.f32.mrb[72].mxu1 }
 0xd02   :  { %v3958_v25 = vpop.f32.mrb[73].mxu1 }
 0xd03   :  { %v3959_v28 = vadd.f32 %v3958_v25, %v3957_v23  ;;  %v3960_v30 = vpop.f32.mrb[74].mxu1 }
 0xd04   :  { %v3961_v31 = vpop.f32.mrb[75].mxu1 }
 0xd05   :  { %v3656_v29 = vadd.f32 %v3959_v28, %v3524_v59 }
 0xd07   :  { %v3662_v6 = vadd.f32 %v3661_v43, %v3656_v29 }
 0xd09   :  { %v3682_v52 = vsel %vm1469_vm2, %v3662_v6, %v3665_v24 }
 0xd0a   :  { %v3684_v51 = vsel %vm3683_vm4, %v3682_v52, %v3669_v9 }
 0xd0b   :  { %v3686_v19 = vsel %vm3685_vm5, %v3684_v51, %v3680_v13 }
 0xd0c   :  { %v3690_v45 = vcombine.low %v3686_v19, %v3687_v39 }
 0xd0e   :  { %3940 = vst.sshfl [vmem:[%s5390_s12] sm:$0x33 pattern:$0x76325410] %v3690_v45 }
 0xd0f   :  { %3704 = vsyncpa [#allocation4], 1 }
 0xd10   :  { %3705 = vsyncpa [#allocation6], 1 }
 0xd11   :  { %3706 = vsyncpa [#allocation9], 1 }

</bundles_post_ra>
